<compile_context>
chip_gen: v7x
topology: tpu7x:2x2x1
jax: 0.10.0
libtpu: 0.0.40
codegen_flags: <defaults>
</compile_context>

<pallas_src>
import functools

import jax
import jax.numpy as jnp
from jax import lax
from jax.experimental import pallas as pl
from jax.experimental.pallas import tpu as pltpu


def _round_up(n, m):
    return ((n + m - 1) // m) * m


def rnn_seq_kernel(x_ref, cat_ref, h0_ref, w1c_ref, w1x_ref, w1h_ref, b1_ref,
                   w2_ref, b2_ref, out_ref, hid_ref, catb_ref, *,
                   ts, t_real, t_pad, b_p, h_p, o_p):
    g = pl.program_id(0)

    @pl.when(g == 0)
    def _():
        # One-time: fold the time-invariant category contribution (+ b1) into a
        # per-batch bias, and seed the hidden carry (lives in the hid output block).
        catb_ref[...] = jnp.dot(cat_ref[...], w1c_ref[...],
                                preferred_element_type=jnp.float32) + b1_ref[...]
        hid_ref[...] = h0_ref[...]

    # Hoisted out of the inner timestep loop (JAX does not CSE broadcast_in_dim).
    cat_bias = catb_ref[...]                              # (b_p, h_p+o_p) f32
    b2 = jnp.broadcast_to(b2_ref[...], (b_p, o_p))        # (b_p, o_p) f32
    w1x = w1x_ref[...]                                    # bf16, VMEM-resident
    w1h = w1h_ref[...]
    w2 = w2_ref[...]

    def step(i, h):
        x = x_ref[i]                                      # (b_p, x_p) bf16
        # fused i2h + i2o, no concat: two dots into the same f32 accumulator
        pre = (jnp.dot(x, w1x, preferred_element_type=jnp.float32)
               + jnp.dot(h.astype(jnp.bfloat16), w1h,
                         preferred_element_type=jnp.float32)
               + cat_bias)                                # (b_p, h_p+o_p) = cat(h_new, i2o)
        h_new = pre[:, :h_p]                              # static 128-aligned slice
        out2 = jnp.dot(pre.astype(jnp.bfloat16), w2,
                       preferred_element_type=jnp.float32) + b2
        # dropout: eval-mode (identity).
        # TODO(synk): training-mode dropout mask (pltpu.prng_seed/prng_random_bits) not applied.
        # Padded lanes already sit at -1e30 (baked into b2) -> plain log-softmax.
        m = jnp.max(out2, axis=1, keepdims=True)
        lse = jnp.log(jnp.sum(jnp.exp(out2 - m), axis=1, keepdims=True)) + m
        out_ref[i] = out2 - lse
        if t_pad == t_real:                               # static: no ragged tail
            return h_new
        t = g * ts + i                                    # freeze carry on padded steps
        return jnp.where(t < t_real, h_new, h)

    hid_ref[...] = lax.fori_loop(0, ts, step, hid_ref[...], unroll=(ts <= 8))


def init_params(key, n_categories, input_size, hidden_size, output_size):
    """nn.Linear-style init: U(-1/sqrt(fan_in), 1/sqrt(fan_in)); weights stored (in, out)."""
    def linear(k, fan_in, fan_out):
        kw, kb = jax.random.split(k)
        bound = 1.0 / jnp.sqrt(fan_in)
        w = jax.random.uniform(kw, (fan_in, fan_out), jnp.float32, -bound, bound)
        b = jax.random.uniform(kb, (1, fan_out), jnp.float32, -bound, bound)
        return w, b

    k1, k2, k3 = jax.random.split(key, 3)
    in_comb = n_categories + input_size + hidden_size
    w_i2h, b_i2h = linear(k1, in_comb, hidden_size)
    w_i2o, b_i2o = linear(k2, in_comb, output_size)
    w_o2o, b_o2o = linear(k3, hidden_size + output_size, output_size)
    return (w_i2h, b_i2h, w_i2o, b_i2o, w_o2o, b_o2o)


def fuse_pad_params(params, n_categories, input_size, hidden_size, output_size):
    """Fuse i2h/i2o into split W1 blocks and o2o into W2; zero-pad to 128 lanes; bf16 weights."""
    (w_i2h, b_i2h, w_i2o, b_i2o, w_o2o, b_o2o) = params
    nc, isz, hsz, osz = n_categories, input_size, hidden_size, output_size
    cat_p = _round_up(nc, 128)
    x_p = _round_up(isz, 128)
    h_p = _round_up(hsz, 128)
    o_p = _round_up(osz, 128)

    def w1_rows(rows, r, r_p):
        w = jnp.zeros((r_p, h_p + o_p), jnp.float32)
        w = w.at[:r, :hsz].set(w_i2h[rows])
        w = w.at[:r, h_p:h_p + osz].set(w_i2o[rows])
        return w.astype(jnp.bfloat16)

    w1_cat = w1_rows(slice(0, nc), nc, cat_p)
    w1_x = w1_rows(slice(nc, nc + isz), isz, x_p)
    w1_h = w1_rows(slice(nc + isz, nc + isz + hsz), hsz, h_p)

    b1 = jnp.zeros((1, h_p + o_p), jnp.float32)
    b1 = b1.at[:, :hsz].set(b_i2h).at[:, h_p:h_p + osz].set(b_i2o)

    w2 = jnp.zeros((h_p + o_p, o_p), jnp.float32)
    w2 = w2.at[:hsz, :osz].set(w_o2o[:hsz])
    w2 = w2.at[h_p:h_p + osz, :osz].set(w_o2o[hsz:])
    w2 = w2.astype(jnp.bfloat16)

    # log-softmax padding mask baked into b2: padded lanes ride the existing bias add
    b2 = jnp.full((1, o_p), -1e30, jnp.float32).at[:, :osz].set(b_o2o)

    return dict(w1_cat=w1_cat, w1_x=w1_x, w1_h=w1_h, b1=b1, w2=w2, b2=b2,
                n_categories=nc, input_size=isz, hidden_size=hsz, output_size=osz,
                cat_p=cat_p, x_p=x_p, h_p=h_p, o_p=o_p)


def rnn_forward_seq(category, inputs, hidden, fused, ts=8):
    """Run the whole sequence in one pallas_call.

    category: (B, n_categories); inputs: (T, B, input_size); hidden: (B, hidden_size)
    returns: (log_probs (T, B, output_size), final hidden (B, hidden_size))
    """
    n_cat, isz = fused["n_categories"], fused["input_size"]
    hsz, osz = fused["hidden_size"], fused["output_size"]
    cat_p, x_p, h_p, o_p = fused["cat_p"], fused["x_p"], fused["h_p"], fused["o_p"]

    T, B = inputs.shape[0], inputs.shape[1]
    ts = max(1, min(ts, T))            # timesteps per grid step
    t_pad = _round_up(T, ts)
    b_p = _round_up(B, 8)              # sublane-friendly batch

    # lane-dense padded per-step input tiles (bf16 -> half the per-step DMA bytes)
    x = jnp.zeros((t_pad, b_p, x_p), jnp.bfloat16)
    x = x.at[:T, :B, :isz].set(inputs.astype(jnp.bfloat16))
    cat = jnp.zeros((b_p, cat_p), jnp.bfloat16).at[:B, :n_cat].set(
        category.astype(jnp.bfloat16))
    h0 = jnp.zeros((b_p, h_p), jnp.float32).at[:B, :hsz].set(hidden)

    kernel = functools.partial(rnn_seq_kernel, ts=ts, t_real=T, t_pad=t_pad,
                               b_p=b_p, h_p=h_p, o_p=o_p)

    out_p, hid_p = pl.pallas_call(
        kernel,
        out_shape=(jax.ShapeDtypeStruct((t_pad, b_p, o_p), jnp.float32),
                   jax.ShapeDtypeStruct((b_p, h_p), jnp.float32)),
        grid_spec=pltpu.PrefetchScalarGridSpec(
            num_scalar_prefetch=0,
            grid=(t_pad // ts,),
            in_specs=[
                pl.BlockSpec((ts, b_p, x_p), lambda g: (g, 0, 0)),        # TS input tiles
                pl.BlockSpec((b_p, cat_p), lambda g: (0, 0)),             # category (resident)
                pl.BlockSpec((b_p, h_p), lambda g: (0, 0)),               # initial hidden
                pl.BlockSpec((cat_p, h_p + o_p), lambda g: (0, 0)),       # W1_cat (resident)
                pl.BlockSpec((x_p, h_p + o_p), lambda g: (0, 0)),         # W1_x   (resident)
                pl.BlockSpec((h_p, h_p + o_p), lambda g: (0, 0)),         # W1_h   (resident)
                pl.BlockSpec((1, h_p + o_p), lambda g: (0, 0)),           # b1     (resident)
                pl.BlockSpec((h_p + o_p, o_p), lambda g: (0, 0)),         # W2     (resident)
                pl.BlockSpec((1, o_p), lambda g: (0, 0)),                 # b2(+mask)
            ],
            out_specs=(
                pl.BlockSpec((ts, b_p, o_p), lambda g: (g, 0, 0)),        # TS log-prob tiles
                pl.BlockSpec((b_p, h_p), lambda g: (0, 0)),               # hidden carry/out
            ),
            scratch_shapes=[pltpu.VMEM((b_p, h_p + o_p), jnp.float32)],   # cat_bias
        ),
        compiler_params=pltpu.CompilerParams(
            dimension_semantics=("arbitrary",),          # recurrence over t is sequential
            vmem_limit_bytes=32 * 1024 * 1024,           # > v5e 16MiB default, fits v7x
        ),
    )(x, cat, h0, fused["w1_cat"], fused["w1_x"], fused["w1_h"], fused["b1"],
      fused["w2"], fused["b2"])

    return out_p[:T, :B, :osz], hid_p[:B, :hsz]


def rnn_forward(category, inp, hidden, fused):
    """Single-step forward matching the original PyTorch module signature."""
    out_seq, hid = rnn_forward_seq(category, inp[None], hidden, fused, ts=1)
    return out_seq[0], hid


if __name__ == "__main__":
    n_categories, input_size, hidden_size, output_size = 4, 8, 32, 8
    batch, seq_len = 2, 8

    key = jax.random.PRNGKey(0)
    kc, ki, kp = jax.random.split(key, 3)

    category = jax.nn.one_hot(
        jax.random.randint(kc, (batch,), 0, n_categories),
        n_categories, dtype=jnp.float32)
    seq_long = 13          # exercises multi-grid-step + ragged-tail path (TS=8 -> 2 grid steps)
    inputs_long = jax.nn.one_hot(
        jax.random.randint(ki, (seq_long, batch), 0, input_size),
        input_size, dtype=jnp.float32)
    inputs = inputs_long[:seq_len]
    hidden0 = jnp.zeros((batch, hidden_size), jnp.float32)

    raw = init_params(kp, n_categories, input_size, hidden_size, output_size)
    fused = fuse_pad_params(raw, n_categories, input_size, hidden_size, output_size)

    # pure-JAX reference: the PyTorch forward unrolled (eval-mode dropout).
    # Weights rounded to bf16 to match the kernel's MXU operand dtype; math in f32.
    (w_i2h, b_i2h, w_i2o, b_i2o, w_o2o, b_o2o) = raw
    bf16_round = lambda w: w.astype(jnp.bfloat16).astype(jnp.float32)
    w_i2h_r, w_i2o_r, w_o2o_r = map(bf16_round, (w_i2h, w_i2o, w_o2o))

    def reference(cat, inp_seq, h):
        outs = []
        for t in range(inp_seq.shape[0]):
            comb = jnp.concatenate([cat, inp_seq[t], h], axis=1)
            h_new = comb @ w_i2h_r + b_i2h
            o = comb @ w_i2o_r + b_i2o
            o2 = jnp.concatenate([h_new, o], axis=1) @ w_o2o_r + b_o2o
            outs.append(jax.nn.log_softmax(o2, axis=1))
            h = h_new
        return jnp.stack(outs, axis=0), h

    # 1) whole sequence, T divisible by TS (single grid step)
    out_seq, hid_final = rnn_forward_seq(category, inputs, hidden0, fused, ts=8)
    jax.block_until_ready((out_seq, hid_final))
    ref_out, ref_h = reference(category, inputs, hidden0)
    assert jnp.allclose(out_seq, ref_out, atol=5e-2), \
        float(jnp.max(jnp.abs(out_seq - ref_out)))
    assert jnp.allclose(hid_final, ref_h, atol=5e-2), \
        float(jnp.max(jnp.abs(hid_final - ref_h)))

    # 2) ragged sequence: T=13, TS=8 -> 2 grid steps, padded tail frozen via guard
    out13, hid13 = rnn_forward_seq(category, inputs_long, hidden0, fused, ts=8)
    jax.block_until_ready((out13, hid13))
    ref13_out, ref13_h = reference(category, inputs_long, hidden0)
    assert jnp.allclose(out13, ref13_out, atol=5e-2), \
        float(jnp.max(jnp.abs(out13 - ref13_out)))
    assert jnp.allclose(hid13, ref13_h, atol=5e-2), \
        float(jnp.max(jnp.abs(hid13 - ref13_h)))

    # 3) single-step API (original module semantics): forward(category, input, hidden)
    out1, hid1 = rnn_forward(category, inputs[0], hidden0, fused)
    jax.block_until_ready((out1, hid1))
    comb0 = jnp.concatenate([category, inputs[0], hidden0], axis=1)
    h1_ref = comb0 @ w_i2h_r + b_i2h
    assert jnp.allclose(out1, ref_out[0], atol=5e-2)
    assert jnp.allclose(hid1, h1_ref, atol=5e-2)

    print("KERNEL_OK")
</pallas_src>

<mosaic_0001>
module attributes {stable_mosaic.version = 11 : i64} {
  func.func @rnn_seq_kernel(%arg0: i32, %arg1: memref<8x8x128xbf16, #tpu.memory_space<vmem>>, %arg2: memref<8x128xbf16, #tpu.memory_space<vmem>>, %arg3: memref<8x128xf32, #tpu.memory_space<vmem>>, %arg4: memref<128x256xbf16, #tpu.memory_space<vmem>>, %arg5: memref<128x256xbf16, #tpu.memory_space<vmem>>, %arg6: memref<128x256xbf16, #tpu.memory_space<vmem>>, %arg7: memref<1x256xf32, #tpu.memory_space<vmem>>, %arg8: memref<256x128xbf16, #tpu.memory_space<vmem>>, %arg9: memref<1x128xf32, #tpu.memory_space<vmem>>, %arg10: memref<8x8x128xf32, #tpu.memory_space<vmem>>, %arg11: memref<8x128xf32, #tpu.memory_space<vmem>>, %arg12: memref<8x256xf32, #tpu.memory_space<vmem>>) attributes {dimension_semantics = [#tpu.dimension_semantics<arbitrary>], iteration_bounds = array<i64: 1>, scalar_prefetch = 0 : i64, scratch_operands = 1 : i64, tpu.core_type = #tpu.core_type<tc>, window_params = [{transform_indices = @transform_0, window_bounds = array<i64: 8, 8, 128>}, {pipeline_mode = #tpu.pipeline_mode<synchronous>, transform_indices = @transform_1, window_bounds = array<i64: 8, 128>}, {pipeline_mode = #tpu.pipeline_mode<synchronous>, transform_indices = @transform_2, window_bounds = array<i64: 8, 128>}, {pipeline_mode = #tpu.pipeline_mode<synchronous>, transform_indices = @transform_3, window_bounds = array<i64: 128, 256>}, {pipeline_mode = #tpu.pipeline_mode<synchronous>, transform_indices = @transform_4, window_bounds = array<i64: 128, 256>}, {pipeline_mode = #tpu.pipeline_mode<synchronous>, transform_indices = @transform_5, window_bounds = array<i64: 128, 256>}, {pipeline_mode = #tpu.pipeline_mode<synchronous>, transform_indices = @transform_6, window_bounds = array<i64: 1, 256>}, {pipeline_mode = #tpu.pipeline_mode<synchronous>, transform_indices = @transform_7, window_bounds = array<i64: 256, 128>}, {pipeline_mode = #tpu.pipeline_mode<synchronous>, transform_indices = @transform_8, window_bounds = array<i64: 1, 128>}, {transform_indices = @transform_9, window_bounds = array<i64: 8, 8, 128>}, {pipeline_mode = #tpu.pipeline_mode<synchronous>, transform_indices = @transform_10, window_bounds = array<i64: 8, 128>}]} {
    %c0_i32 = arith.constant 0 : i32
    %0 = arith.cmpi eq, %arg0, %c0_i32 : i32
    %1 = arith.extui %0 : i1 to i32
    %c0_i32_0 = arith.constant 0 : i32
    %2 = arith.cmpi ne, %1, %c0_i32_0 : i32
    scf.if %2 {
      %c0_86 = arith.constant 0 : index
      %c0_87 = arith.constant 0 : index
      %228 = vector.load %arg2[%c0_86, %c0_87] : memref<8x128xbf16, #tpu.memory_space<vmem>>, vector<8x128xbf16>
      %c0_88 = arith.constant 0 : index
      %c0_89 = arith.constant 0 : index
      %229 = vector.load %arg4[%c0_88, %c0_89] : memref<128x256xbf16, #tpu.memory_space<vmem>>, vector<128x256xbf16>
      %cst_90 = arith.constant dense<0.000000e+00> : vector<8x256xf32>
      %230 = tpu.matmul %228, %229, %cst_90 {dimension_numbers = #tpu.dot_dimension_numbers<[1], [0], [0], [1], [0, 0, 1, 1], [], []>} : vector<8x128xbf16>, vector<128x256xbf16>, vector<8x256xf32> -> vector<8x256xf32>
      %c0_91 = arith.constant 0 : index
      %c0_92 = arith.constant 0 : index
      %231 = vector.load %arg7[%c0_91, %c0_92] : memref<1x256xf32, #tpu.memory_space<vmem>>, vector<1x256xf32>
      %232 = vector.broadcast %231 : vector<1x256xf32> to vector<8x256xf32>
      %233 = arith.addf %230, %232 : vector<8x256xf32>
      %c0_93 = arith.constant 0 : index
      %c0_94 = arith.constant 0 : index
      %234 = vector.load %arg12[%c0_93, %c0_94] : memref<8x256xf32, #tpu.memory_space<vmem>>, vector<8x256xf32>
      tpu.vector_store %arg12[%c0_93, %c0_94], %233 {strides = array<i32>} : memref<8x256xf32, #tpu.memory_space<vmem>>, vector<8x256xf32>,
      %c0_95 = arith.constant 0 : index
      %c0_96 = arith.constant 0 : index
      %235 = vector.load %arg3[%c0_95, %c0_96] : memref<8x128xf32, #tpu.memory_space<vmem>>, vector<8x128xf32>
      %c0_97 = arith.constant 0 : index
      %c0_98 = arith.constant 0 : index
      %236 = vector.load %arg11[%c0_97, %c0_98] : memref<8x128xf32, #tpu.memory_space<vmem>>, vector<8x128xf32>
      tpu.vector_store %arg11[%c0_97, %c0_98], %235 {strides = array<i32>} : memref<8x128xf32, #tpu.memory_space<vmem>>, vector<8x128xf32>,
    } else {
    }
    %c0 = arith.constant 0 : index
    %c0_1 = arith.constant 0 : index
    %3 = vector.load %arg12[%c0, %c0_1] : memref<8x256xf32, #tpu.memory_space<vmem>>, vector<8x256xf32>
    %c0_2 = arith.constant 0 : index
    %c0_3 = arith.constant 0 : index
    %4 = vector.load %arg9[%c0_2, %c0_3] : memref<1x128xf32, #tpu.memory_space<vmem>>, vector<1x128xf32>
    %5 = vector.shape_cast %4 : vector<1x128xf32> to vector<1x128xf32>
    %6 = vector.broadcast %5 : vector<1x128xf32> to vector<8x128xf32>
    %c0_4 = arith.constant 0 : index
    %c0_5 = arith.constant 0 : index
    %7 = vector.load %arg5[%c0_4, %c0_5] : memref<128x256xbf16, #tpu.memory_space<vmem>>, vector<128x256xbf16>
    %c0_6 = arith.constant 0 : index
    %c0_7 = arith.constant 0 : index
    %8 = vector.load %arg6[%c0_6, %c0_7] : memref<128x256xbf16, #tpu.memory_space<vmem>>, vector<128x256xbf16>
    %c0_8 = arith.constant 0 : index
    %c0_9 = arith.constant 0 : index
    %9 = vector.load %arg8[%c0_8, %c0_9] : memref<256x128xbf16, #tpu.memory_space<vmem>>, vector<256x128xbf16>
    %c0_10 = arith.constant 0 : index
    %c0_11 = arith.constant 0 : index
    %10 = vector.load %arg11[%c0_10, %c0_11] : memref<8x128xf32, #tpu.memory_space<vmem>>, vector<8x128xf32>
    %c0_i32_12 = arith.constant 0 : i32
    %11 = arith.index_cast %c0_i32_12 : i32 to index
    %c0_13 = arith.constant 0 : index
    %c0_14 = arith.constant 0 : index
    %12 = vector.load %arg1[%11, %c0_13, %c0_14] : memref<8x8x128xbf16, #tpu.memory_space<vmem>>, vector<1x8x128xbf16>
    %13 = vector.shape_cast %12 : vector<1x8x128xbf16> to vector<8x128xbf16>
    %cst = arith.constant dense<0.000000e+00> : vector<8x256xf32>
    %14 = tpu.matmul %13, %7, %cst {dimension_numbers = #tpu.dot_dimension_numbers<[1], [0], [0], [1], [0, 0, 1, 1], [], []>} : vector<8x128xbf16>, vector<128x256xbf16>, vector<8x256xf32> -> vector<8x256xf32>
    %15 = arith.truncf %10 : vector<8x128xf32> to vector<8x128xbf16>
    %cst_15 = arith.constant dense<0.000000e+00> : vector<8x256xf32>
    %16 = tpu.matmul %15, %8, %cst_15 {dimension_numbers = #tpu.dot_dimension_numbers<[1], [0], [0], [1], [0, 0, 1, 1], [], []>} : vector<8x128xbf16>, vector<128x256xbf16>, vector<8x256xf32> -> vector<8x256xf32>
    %17 = arith.addf %14, %16 : vector<8x256xf32>
    %18 = arith.addf %17, %3 : vector<8x256xf32>
    %19 = vector.extract_strided_slice %18 {offsets = [0, 0], sizes = [8, 128], strides = [1, 1]} : vector<8x256xf32> to vector<8x128xf32>
    %20 = arith.truncf %18 : vector<8x256xf32> to vector<8x256xbf16>
    %cst_16 = arith.constant dense<0.000000e+00> : vector<8x128xf32>
    %21 = tpu.matmul %20, %9, %cst_16 {dimension_numbers = #tpu.dot_dimension_numbers<[1], [0], [0], [1], [0, 0, 1, 1], [], []>} : vector<8x256xbf16>, vector<256x128xbf16>, vector<8x128xf32> -> vector<8x128xf32>
    %22 = arith.addf %21, %6 : vector<8x128xf32>
    %cst_17 = arith.constant dense<0xFF800000> : vector<8xf32>
    %23 = vector.multi_reduction <maximumf>, %22, %cst_17 [1] : vector<8x128xf32> to vector<8xf32>
    %24 = vector.shape_cast %23 : vector<8xf32> to vector<8x1xf32>
    %25 = vector.broadcast %24 : vector<8x1xf32> to vector<8x128xf32>
    %26 = arith.subf %22, %25 : vector<8x128xf32>
    %27 = math.exp %26 : vector<8x128xf32>
    %cst_18 = arith.constant dense<0.000000e+00> : vector<8xf32>
    %28 = vector.multi_reduction <add>, %27, %cst_18 [1] : vector<8x128xf32> to vector<8xf32>
    %29 = vector.shape_cast %28 : vector<8xf32> to vector<8x1xf32>
    %30 = math.log %29 : vector<8x1xf32>
    %31 = arith.addf %30, %24 : vector<8x1xf32>
    %32 = vector.broadcast %31 : vector<8x1xf32> to vector<8x128xf32>
    %33 = arith.subf %22, %32 : vector<8x128xf32>
    %34 = arith.index_cast %c0_i32_12 : i32 to index
    %c0_19 = arith.constant 0 : index
    %c0_20 = arith.constant 0 : index
    %35 = vector.load %arg10[%34, %c0_19, %c0_20] : memref<8x8x128xf32, #tpu.memory_space<vmem>>, vector<1x8x128xf32>
    %36 = vector.shape_cast %35 : vector<1x8x128xf32> to vector<8x128xf32>
    %37 = vector.shape_cast %33 : vector<8x128xf32> to vector<1x8x128xf32>
    tpu.vector_store %arg10[%34, %c0_19, %c0_20], %37 {strides = array<i32>} : memref<8x8x128xf32, #tpu.memory_space<vmem>>, vector<1x8x128xf32>,
    %c1_i32 = arith.constant 1 : i32
    %38 = arith.index_cast %c1_i32 : i32 to index
    %c0_21 = arith.constant 0 : index
    %c0_22 = arith.constant 0 : index
    %39 = vector.load %arg1[%38, %c0_21, %c0_22] : memref<8x8x128xbf16, #tpu.memory_space<vmem>>, vector<1x8x128xbf16>
    %40 = vector.shape_cast %39 : vector<1x8x128xbf16> to vector<8x128xbf16>
    %cst_23 = arith.constant dense<0.000000e+00> : vector<8x256xf32>
    %41 = tpu.matmul %40, %7, %cst_23 {dimension_numbers = #tpu.dot_dimension_numbers<[1], [0], [0], [1], [0, 0, 1, 1], [], []>} : vector<8x128xbf16>, vector<128x256xbf16>, vector<8x256xf32> -> vector<8x256xf32>
    %42 = arith.truncf %19 : vector<8x128xf32> to vector<8x128xbf16>
    %cst_24 = arith.constant dense<0.000000e+00> : vector<8x256xf32>
    %43 = tpu.matmul %42, %8, %cst_24 {dimension_numbers = #tpu.dot_dimension_numbers<[1], [0], [0], [1], [0, 0, 1, 1], [], []>} : vector<8x128xbf16>, vector<128x256xbf16>, vector<8x256xf32> -> vector<8x256xf32>
    %44 = arith.addf %41, %43 : vector<8x256xf32>
    %45 = arith.addf %44, %3 : vector<8x256xf32>
    %46 = vector.extract_strided_slice %45 {offsets = [0, 0], sizes = [8, 128], strides = [1, 1]} : vector<8x256xf32> to vector<8x128xf32>
    %47 = arith.truncf %45 : vector<8x256xf32> to vector<8x256xbf16>
    %cst_25 = arith.constant dense<0.000000e+00> : vector<8x128xf32>
    %48 = tpu.matmul %47, %9, %cst_25 {dimension_numbers = #tpu.dot_dimension_numbers<[1], [0], [0], [1], [0, 0, 1, 1], [], []>} : vector<8x256xbf16>, vector<256x128xbf16>, vector<8x128xf32> -> vector<8x128xf32>
    %49 = arith.addf %48, %6 : vector<8x128xf32>
    %cst_26 = arith.constant dense<0xFF800000> : vector<8xf32>
    %50 = vector.multi_reduction <maximumf>, %49, %cst_26 [1] : vector<8x128xf32> to vector<8xf32>
    %51 = vector.shape_cast %50 : vector<8xf32> to vector<8x1xf32>
    %52 = vector.broadcast %51 : vector<8x1xf32> to vector<8x128xf32>
    %53 = arith.subf %49, %52 : vector<8x128xf32>
    %54 = math.exp %53 : vector<8x128xf32>
    %cst_27 = arith.constant dense<0.000000e+00> : vector<8xf32>
    %55 = vector.multi_reduction <add>, %54, %cst_27 [1] : vector<8x128xf32> to vector<8xf32>
    %56 = vector.shape_cast %55 : vector<8xf32> to vector<8x1xf32>
    %57 = math.log %56 : vector<8x1xf32>
    %58 = arith.addf %57, %51 : vector<8x1xf32>
    %59 = vector.broadcast %58 : vector<8x1xf32> to vector<8x128xf32>
    %60 = arith.subf %49, %59 : vector<8x128xf32>
    %61 = arith.index_cast %c1_i32 : i32 to index
    %c0_28 = arith.constant 0 : index
    %c0_29 = arith.constant 0 : index
    %62 = vector.load %arg10[%61, %c0_28, %c0_29] : memref<8x8x128xf32, #tpu.memory_space<vmem>>, vector<1x8x128xf32>
    %63 = vector.shape_cast %62 : vector<1x8x128xf32> to vector<8x128xf32>
    %64 = vector.shape_cast %60 : vector<8x128xf32> to vector<1x8x128xf32>
    tpu.vector_store %arg10[%61, %c0_28, %c0_29], %64 {strides = array<i32>} : memref<8x8x128xf32, #tpu.memory_space<vmem>>, vector<1x8x128xf32>,
    %c2_i32 = arith.constant 2 : i32
    %65 = arith.index_cast %c2_i32 : i32 to index
    %c0_30 = arith.constant 0 : index
    %c0_31 = arith.constant 0 : index
    %66 = vector.load %arg1[%65, %c0_30, %c0_31] : memref<8x8x128xbf16, #tpu.memory_space<vmem>>, vector<1x8x128xbf16>
    %67 = vector.shape_cast %66 : vector<1x8x128xbf16> to vector<8x128xbf16>
    %cst_32 = arith.constant dense<0.000000e+00> : vector<8x256xf32>
    %68 = tpu.matmul %67, %7, %cst_32 {dimension_numbers = #tpu.dot_dimension_numbers<[1], [0], [0], [1], [0, 0, 1, 1], [], []>} : vector<8x128xbf16>, vector<128x256xbf16>, vector<8x256xf32> -> vector<8x256xf32>
    %69 = arith.truncf %46 : vector<8x128xf32> to vector<8x128xbf16>
    %cst_33 = arith.constant dense<0.000000e+00> : vector<8x256xf32>
    %70 = tpu.matmul %69, %8, %cst_33 {dimension_numbers = #tpu.dot_dimension_numbers<[1], [0], [0], [1], [0, 0, 1, 1], [], []>} : vector<8x128xbf16>, vector<128x256xbf16>, vector<8x256xf32> -> vector<8x256xf32>
    %71 = arith.addf %68, %70 : vector<8x256xf32>
    %72 = arith.addf %71, %3 : vector<8x256xf32>
    %73 = vector.extract_strided_slice %72 {offsets = [0, 0], sizes = [8, 128], strides = [1, 1]} : vector<8x256xf32> to vector<8x128xf32>
    %74 = arith.truncf %72 : vector<8x256xf32> to vector<8x256xbf16>
    %cst_34 = arith.constant dense<0.000000e+00> : vector<8x128xf32>
    %75 = tpu.matmul %74, %9, %cst_34 {dimension_numbers = #tpu.dot_dimension_numbers<[1], [0], [0], [1], [0, 0, 1, 1], [], []>} : vector<8x256xbf16>, vector<256x128xbf16>, vector<8x128xf32> -> vector<8x128xf32>
    %76 = arith.addf %75, %6 : vector<8x128xf32>
    %cst_35 = arith.constant dense<0xFF800000> : vector<8xf32>
    %77 = vector.multi_reduction <maximumf>, %76, %cst_35 [1] : vector<8x128xf32> to vector<8xf32>
    %78 = vector.shape_cast %77 : vector<8xf32> to vector<8x1xf32>
    %79 = vector.broadcast %78 : vector<8x1xf32> to vector<8x128xf32>
    %80 = arith.subf %76, %79 : vector<8x128xf32>
    %81 = math.exp %80 : vector<8x128xf32>
    %cst_36 = arith.constant dense<0.000000e+00> : vector<8xf32>
    %82 = vector.multi_reduction <add>, %81, %cst_36 [1] : vector<8x128xf32> to vector<8xf32>
    %83 = vector.shape_cast %82 : vector<8xf32> to vector<8x1xf32>
    %84 = math.log %83 : vector<8x1xf32>
    %85 = arith.addf %84, %78 : vector<8x1xf32>
    %86 = vector.broadcast %85 : vector<8x1xf32> to vector<8x128xf32>
    %87 = arith.subf %76, %86 : vector<8x128xf32>
    %88 = arith.index_cast %c2_i32 : i32 to index
    %c0_37 = arith.constant 0 : index
    %c0_38 = arith.constant 0 : index
    %89 = vector.load %arg10[%88, %c0_37, %c0_38] : memref<8x8x128xf32, #tpu.memory_space<vmem>>, vector<1x8x128xf32>
    %90 = vector.shape_cast %89 : vector<1x8x128xf32> to vector<8x128xf32>
    %91 = vector.shape_cast %87 : vector<8x128xf32> to vector<1x8x128xf32>
    tpu.vector_store %arg10[%88, %c0_37, %c0_38], %91 {strides = array<i32>} : memref<8x8x128xf32, #tpu.memory_space<vmem>>, vector<1x8x128xf32>,
    %c3_i32 = arith.constant 3 : i32
    %92 = arith.index_cast %c3_i32 : i32 to index
    %c0_39 = arith.constant 0 : index
    %c0_40 = arith.constant 0 : index
    %93 = vector.load %arg1[%92, %c0_39, %c0_40] : memref<8x8x128xbf16, #tpu.memory_space<vmem>>, vector<1x8x128xbf16>
    %94 = vector.shape_cast %93 : vector<1x8x128xbf16> to vector<8x128xbf16>
    %cst_41 = arith.constant dense<0.000000e+00> : vector<8x256xf32>
    %95 = tpu.matmul %94, %7, %cst_41 {dimension_numbers = #tpu.dot_dimension_numbers<[1], [0], [0], [1], [0, 0, 1, 1], [], []>} : vector<8x128xbf16>, vector<128x256xbf16>, vector<8x256xf32> -> vector<8x256xf32>
    %96 = arith.truncf %73 : vector<8x128xf32> to vector<8x128xbf16>
    %cst_42 = arith.constant dense<0.000000e+00> : vector<8x256xf32>
    %97 = tpu.matmul %96, %8, %cst_42 {dimension_numbers = #tpu.dot_dimension_numbers<[1], [0], [0], [1], [0, 0, 1, 1], [], []>} : vector<8x128xbf16>, vector<128x256xbf16>, vector<8x256xf32> -> vector<8x256xf32>
    %98 = arith.addf %95, %97 : vector<8x256xf32>
    %99 = arith.addf %98, %3 : vector<8x256xf32>
    %100 = vector.extract_strided_slice %99 {offsets = [0, 0], sizes = [8, 128], strides = [1, 1]} : vector<8x256xf32> to vector<8x128xf32>
    %101 = arith.truncf %99 : vector<8x256xf32> to vector<8x256xbf16>
    %cst_43 = arith.constant dense<0.000000e+00> : vector<8x128xf32>
    %102 = tpu.matmul %101, %9, %cst_43 {dimension_numbers = #tpu.dot_dimension_numbers<[1], [0], [0], [1], [0, 0, 1, 1], [], []>} : vector<8x256xbf16>, vector<256x128xbf16>, vector<8x128xf32> -> vector<8x128xf32>
    %103 = arith.addf %102, %6 : vector<8x128xf32>
    %cst_44 = arith.constant dense<0xFF800000> : vector<8xf32>
    %104 = vector.multi_reduction <maximumf>, %103, %cst_44 [1] : vector<8x128xf32> to vector<8xf32>
    %105 = vector.shape_cast %104 : vector<8xf32> to vector<8x1xf32>
    %106 = vector.broadcast %105 : vector<8x1xf32> to vector<8x128xf32>
    %107 = arith.subf %103, %106 : vector<8x128xf32>
    %108 = math.exp %107 : vector<8x128xf32>
    %cst_45 = arith.constant dense<0.000000e+00> : vector<8xf32>
    %109 = vector.multi_reduction <add>, %108, %cst_45 [1] : vector<8x128xf32> to vector<8xf32>
    %110 = vector.shape_cast %109 : vector<8xf32> to vector<8x1xf32>
    %111 = math.log %110 : vector<8x1xf32>
    %112 = arith.addf %111, %105 : vector<8x1xf32>
    %113 = vector.broadcast %112 : vector<8x1xf32> to vector<8x128xf32>
    %114 = arith.subf %103, %113 : vector<8x128xf32>
    %115 = arith.index_cast %c3_i32 : i32 to index
    %c0_46 = arith.constant 0 : index
    %c0_47 = arith.constant 0 : index
    %116 = vector.load %arg10[%115, %c0_46, %c0_47] : memref<8x8x128xf32, #tpu.memory_space<vmem>>, vector<1x8x128xf32>
    %117 = vector.shape_cast %116 : vector<1x8x128xf32> to vector<8x128xf32>
    %118 = vector.shape_cast %114 : vector<8x128xf32> to vector<1x8x128xf32>
    tpu.vector_store %arg10[%115, %c0_46, %c0_47], %118 {strides = array<i32>} : memref<8x8x128xf32, #tpu.memory_space<vmem>>, vector<1x8x128xf32>,
    %c4_i32 = arith.constant 4 : i32
    %119 = arith.index_cast %c4_i32 : i32 to index
    %c0_48 = arith.constant 0 : index
    %c0_49 = arith.constant 0 : index
    %120 = vector.load %arg1[%119, %c0_48, %c0_49] : memref<8x8x128xbf16, #tpu.memory_space<vmem>>, vector<1x8x128xbf16>
    %121 = vector.shape_cast %120 : vector<1x8x128xbf16> to vector<8x128xbf16>
    %cst_50 = arith.constant dense<0.000000e+00> : vector<8x256xf32>
    %122 = tpu.matmul %121, %7, %cst_50 {dimension_numbers = #tpu.dot_dimension_numbers<[1], [0], [0], [1], [0, 0, 1, 1], [], []>} : vector<8x128xbf16>, vector<128x256xbf16>, vector<8x256xf32> -> vector<8x256xf32>
    %123 = arith.truncf %100 : vector<8x128xf32> to vector<8x128xbf16>
    %cst_51 = arith.constant dense<0.000000e+00> : vector<8x256xf32>
    %124 = tpu.matmul %123, %8, %cst_51 {dimension_numbers = #tpu.dot_dimension_numbers<[1], [0], [0], [1], [0, 0, 1, 1], [], []>} : vector<8x128xbf16>, vector<128x256xbf16>, vector<8x256xf32> -> vector<8x256xf32>
    %125 = arith.addf %122, %124 : vector<8x256xf32>
    %126 = arith.addf %125, %3 : vector<8x256xf32>
    %127 = vector.extract_strided_slice %126 {offsets = [0, 0], sizes = [8, 128], strides = [1, 1]} : vector<8x256xf32> to vector<8x128xf32>
    %128 = arith.truncf %126 : vector<8x256xf32> to vector<8x256xbf16>
    %cst_52 = arith.constant dense<0.000000e+00> : vector<8x128xf32>
    %129 = tpu.matmul %128, %9, %cst_52 {dimension_numbers = #tpu.dot_dimension_numbers<[1], [0], [0], [1], [0, 0, 1, 1], [], []>} : vector<8x256xbf16>, vector<256x128xbf16>, vector<8x128xf32> -> vector<8x128xf32>
    %130 = arith.addf %129, %6 : vector<8x128xf32>
    %cst_53 = arith.constant dense<0xFF800000> : vector<8xf32>
    %131 = vector.multi_reduction <maximumf>, %130, %cst_53 [1] : vector<8x128xf32> to vector<8xf32>
    %132 = vector.shape_cast %131 : vector<8xf32> to vector<8x1xf32>
    %133 = vector.broadcast %132 : vector<8x1xf32> to vector<8x128xf32>
    %134 = arith.subf %130, %133 : vector<8x128xf32>
    %135 = math.exp %134 : vector<8x128xf32>
    %cst_54 = arith.constant dense<0.000000e+00> : vector<8xf32>
    %136 = vector.multi_reduction <add>, %135, %cst_54 [1] : vector<8x128xf32> to vector<8xf32>
    %137 = vector.shape_cast %136 : vector<8xf32> to vector<8x1xf32>
    %138 = math.log %137 : vector<8x1xf32>
    %139 = arith.addf %138, %132 : vector<8x1xf32>
    %140 = vector.broadcast %139 : vector<8x1xf32> to vector<8x128xf32>
    %141 = arith.subf %130, %140 : vector<8x128xf32>
    %142 = arith.index_cast %c4_i32 : i32 to index
    %c0_55 = arith.constant 0 : index
    %c0_56 = arith.constant 0 : index
    %143 = vector.load %arg10[%142, %c0_55, %c0_56] : memref<8x8x128xf32, #tpu.memory_space<vmem>>, vector<1x8x128xf32>
    %144 = vector.shape_cast %143 : vector<1x8x128xf32> to vector<8x128xf32>
    %145 = vector.shape_cast %141 : vector<8x128xf32> to vector<1x8x128xf32>
    tpu.vector_store %arg10[%142, %c0_55, %c0_56], %145 {strides = array<i32>} : memref<8x8x128xf32, #tpu.memory_space<vmem>>, vector<1x8x128xf32>,
    %c5_i32 = arith.constant 5 : i32
    %146 = arith.index_cast %c5_i32 : i32 to index
    %c0_57 = arith.constant 0 : index
    %c0_58 = arith.constant 0 : index
    %147 = vector.load %arg1[%146, %c0_57, %c0_58] : memref<8x8x128xbf16, #tpu.memory_space<vmem>>, vector<1x8x128xbf16>
    %148 = vector.shape_cast %147 : vector<1x8x128xbf16> to vector<8x128xbf16>
    %cst_59 = arith.constant dense<0.000000e+00> : vector<8x256xf32>
    %149 = tpu.matmul %148, %7, %cst_59 {dimension_numbers = #tpu.dot_dimension_numbers<[1], [0], [0], [1], [0, 0, 1, 1], [], []>} : vector<8x128xbf16>, vector<128x256xbf16>, vector<8x256xf32> -> vector<8x256xf32>
    %150 = arith.truncf %127 : vector<8x128xf32> to vector<8x128xbf16>
    %cst_60 = arith.constant dense<0.000000e+00> : vector<8x256xf32>
    %151 = tpu.matmul %150, %8, %cst_60 {dimension_numbers = #tpu.dot_dimension_numbers<[1], [0], [0], [1], [0, 0, 1, 1], [], []>} : vector<8x128xbf16>, vector<128x256xbf16>, vector<8x256xf32> -> vector<8x256xf32>
    %152 = arith.addf %149, %151 : vector<8x256xf32>
    %153 = arith.addf %152, %3 : vector<8x256xf32>
    %154 = vector.extract_strided_slice %153 {offsets = [0, 0], sizes = [8, 128], strides = [1, 1]} : vector<8x256xf32> to vector<8x128xf32>
    %155 = arith.truncf %153 : vector<8x256xf32> to vector<8x256xbf16>
    %cst_61 = arith.constant dense<0.000000e+00> : vector<8x128xf32>
    %156 = tpu.matmul %155, %9, %cst_61 {dimension_numbers = #tpu.dot_dimension_numbers<[1], [0], [0], [1], [0, 0, 1, 1], [], []>} : vector<8x256xbf16>, vector<256x128xbf16>, vector<8x128xf32> -> vector<8x128xf32>
    %157 = arith.addf %156, %6 : vector<8x128xf32>
    %cst_62 = arith.constant dense<0xFF800000> : vector<8xf32>
    %158 = vector.multi_reduction <maximumf>, %157, %cst_62 [1] : vector<8x128xf32> to vector<8xf32>
    %159 = vector.shape_cast %158 : vector<8xf32> to vector<8x1xf32>
    %160 = vector.broadcast %159 : vector<8x1xf32> to vector<8x128xf32>
    %161 = arith.subf %157, %160 : vector<8x128xf32>
    %162 = math.exp %161 : vector<8x128xf32>
    %cst_63 = arith.constant dense<0.000000e+00> : vector<8xf32>
    %163 = vector.multi_reduction <add>, %162, %cst_63 [1] : vector<8x128xf32> to vector<8xf32>
    %164 = vector.shape_cast %163 : vector<8xf32> to vector<8x1xf32>
    %165 = math.log %164 : vector<8x1xf32>
    %166 = arith.addf %165, %159 : vector<8x1xf32>
    %167 = vector.broadcast %166 : vector<8x1xf32> to vector<8x128xf32>
    %168 = arith.subf %157, %167 : vector<8x128xf32>
    %169 = arith.index_cast %c5_i32 : i32 to index
    %c0_64 = arith.constant 0 : index
    %c0_65 = arith.constant 0 : index
    %170 = vector.load %arg10[%169, %c0_64, %c0_65] : memref<8x8x128xf32, #tpu.memory_space<vmem>>, vector<1x8x128xf32>
    %171 = vector.shape_cast %170 : vector<1x8x128xf32> to vector<8x128xf32>
    %172 = vector.shape_cast %168 : vector<8x128xf32> to vector<1x8x128xf32>
    tpu.vector_store %arg10[%169, %c0_64, %c0_65], %172 {strides = array<i32>} : memref<8x8x128xf32, #tpu.memory_space<vmem>>, vector<1x8x128xf32>,
    %c6_i32 = arith.constant 6 : i32
    %173 = arith.index_cast %c6_i32 : i32 to index
    %c0_66 = arith.constant 0 : index
    %c0_67 = arith.constant 0 : index
    %174 = vector.load %arg1[%173, %c0_66, %c0_67] : memref<8x8x128xbf16, #tpu.memory_space<vmem>>, vector<1x8x128xbf16>
    %175 = vector.shape_cast %174 : vector<1x8x128xbf16> to vector<8x128xbf16>
    %cst_68 = arith.constant dense<0.000000e+00> : vector<8x256xf32>
    %176 = tpu.matmul %175, %7, %cst_68 {dimension_numbers = #tpu.dot_dimension_numbers<[1], [0], [0], [1], [0, 0, 1, 1], [], []>} : vector<8x128xbf16>, vector<128x256xbf16>, vector<8x256xf32> -> vector<8x256xf32>
    %177 = arith.truncf %154 : vector<8x128xf32> to vector<8x128xbf16>
    %cst_69 = arith.constant dense<0.000000e+00> : vector<8x256xf32>
    %178 = tpu.matmul %177, %8, %cst_69 {dimension_numbers = #tpu.dot_dimension_numbers<[1], [0], [0], [1], [0, 0, 1, 1], [], []>} : vector<8x128xbf16>, vector<128x256xbf16>, vector<8x256xf32> -> vector<8x256xf32>
    %179 = arith.addf %176, %178 : vector<8x256xf32>
    %180 = arith.addf %179, %3 : vector<8x256xf32>
    %181 = vector.extract_strided_slice %180 {offsets = [0, 0], sizes = [8, 128], strides = [1, 1]} : vector<8x256xf32> to vector<8x128xf32>
    %182 = arith.truncf %180 : vector<8x256xf32> to vector<8x256xbf16>
    %cst_70 = arith.constant dense<0.000000e+00> : vector<8x128xf32>
    %183 = tpu.matmul %182, %9, %cst_70 {dimension_numbers = #tpu.dot_dimension_numbers<[1], [0], [0], [1], [0, 0, 1, 1], [], []>} : vector<8x256xbf16>, vector<256x128xbf16>, vector<8x128xf32> -> vector<8x128xf32>
    %184 = arith.addf %183, %6 : vector<8x128xf32>
    %cst_71 = arith.constant dense<0xFF800000> : vector<8xf32>
    %185 = vector.multi_reduction <maximumf>, %184, %cst_71 [1] : vector<8x128xf32> to vector<8xf32>
    %186 = vector.shape_cast %185 : vector<8xf32> to vector<8x1xf32>
    %187 = vector.broadcast %186 : vector<8x1xf32> to vector<8x128xf32>
    %188 = arith.subf %184, %187 : vector<8x128xf32>
    %189 = math.exp %188 : vector<8x128xf32>
    %cst_72 = arith.constant dense<0.000000e+00> : vector<8xf32>
    %190 = vector.multi_reduction <add>, %189, %cst_72 [1] : vector<8x128xf32> to vector<8xf32>
    %191 = vector.shape_cast %190 : vector<8xf32> to vector<8x1xf32>
    %192 = math.log %191 : vector<8x1xf32>
    %193 = arith.addf %192, %186 : vector<8x1xf32>
    %194 = vector.broadcast %193 : vector<8x1xf32> to vector<8x128xf32>
    %195 = arith.subf %184, %194 : vector<8x128xf32>
    %196 = arith.index_cast %c6_i32 : i32 to index
    %c0_73 = arith.constant 0 : index
    %c0_74 = arith.constant 0 : index
    %197 = vector.load %arg10[%196, %c0_73, %c0_74] : memref<8x8x128xf32, #tpu.memory_space<vmem>>, vector<1x8x128xf32>
    %198 = vector.shape_cast %197 : vector<1x8x128xf32> to vector<8x128xf32>
    %199 = vector.shape_cast %195 : vector<8x128xf32> to vector<1x8x128xf32>
    tpu.vector_store %arg10[%196, %c0_73, %c0_74], %199 {strides = array<i32>} : memref<8x8x128xf32, #tpu.memory_space<vmem>>, vector<1x8x128xf32>,
    %c7_i32 = arith.constant 7 : i32
    %200 = arith.index_cast %c7_i32 : i32 to index
    %c0_75 = arith.constant 0 : index
    %c0_76 = arith.constant 0 : index
    %201 = vector.load %arg1[%200, %c0_75, %c0_76] : memref<8x8x128xbf16, #tpu.memory_space<vmem>>, vector<1x8x128xbf16>
    %202 = vector.shape_cast %201 : vector<1x8x128xbf16> to vector<8x128xbf16>
    %cst_77 = arith.constant dense<0.000000e+00> : vector<8x256xf32>
    %203 = tpu.matmul %202, %7, %cst_77 {dimension_numbers = #tpu.dot_dimension_numbers<[1], [0], [0], [1], [0, 0, 1, 1], [], []>} : vector<8x128xbf16>, vector<128x256xbf16>, vector<8x256xf32> -> vector<8x256xf32>
    %204 = arith.truncf %181 : vector<8x128xf32> to vector<8x128xbf16>
    %cst_78 = arith.constant dense<0.000000e+00> : vector<8x256xf32>
    %205 = tpu.matmul %204, %8, %cst_78 {dimension_numbers = #tpu.dot_dimension_numbers<[1], [0], [0], [1], [0, 0, 1, 1], [], []>} : vector<8x128xbf16>, vector<128x256xbf16>, vector<8x256xf32> -> vector<8x256xf32>
    %206 = arith.addf %203, %205 : vector<8x256xf32>
    %207 = arith.addf %206, %3 : vector<8x256xf32>
    %208 = vector.extract_strided_slice %207 {offsets = [0, 0], sizes = [8, 128], strides = [1, 1]} : vector<8x256xf32> to vector<8x128xf32>
    %209 = arith.truncf %207 : vector<8x256xf32> to vector<8x256xbf16>
    %cst_79 = arith.constant dense<0.000000e+00> : vector<8x128xf32>
    %210 = tpu.matmul %209, %9, %cst_79 {dimension_numbers = #tpu.dot_dimension_numbers<[1], [0], [0], [1], [0, 0, 1, 1], [], []>} : vector<8x256xbf16>, vector<256x128xbf16>, vector<8x128xf32> -> vector<8x128xf32>
    %211 = arith.addf %210, %6 : vector<8x128xf32>
    %cst_80 = arith.constant dense<0xFF800000> : vector<8xf32>
    %212 = vector.multi_reduction <maximumf>, %211, %cst_80 [1] : vector<8x128xf32> to vector<8xf32>
    %213 = vector.shape_cast %212 : vector<8xf32> to vector<8x1xf32>
    %214 = vector.broadcast %213 : vector<8x1xf32> to vector<8x128xf32>
    %215 = arith.subf %211, %214 : vector<8x128xf32>
    %216 = math.exp %215 : vector<8x128xf32>
    %cst_81 = arith.constant dense<0.000000e+00> : vector<8xf32>
    %217 = vector.multi_reduction <add>, %216, %cst_81 [1] : vector<8x128xf32> to vector<8xf32>
    %218 = vector.shape_cast %217 : vector<8xf32> to vector<8x1xf32>
    %219 = math.log %218 : vector<8x1xf32>
    %220 = arith.addf %219, %213 : vector<8x1xf32>
    %221 = vector.broadcast %220 : vector<8x1xf32> to vector<8x128xf32>
    %222 = arith.subf %211, %221 : vector<8x128xf32>
    %223 = arith.index_cast %c7_i32 : i32 to index
    %c0_82 = arith.constant 0 : index
    %c0_83 = arith.constant 0 : index
    %224 = vector.load %arg10[%223, %c0_82, %c0_83] : memref<8x8x128xf32, #tpu.memory_space<vmem>>, vector<1x8x128xf32>
    %225 = vector.shape_cast %224 : vector<1x8x128xf32> to vector<8x128xf32>
    %226 = vector.shape_cast %222 : vector<8x128xf32> to vector<1x8x128xf32>
    tpu.vector_store %arg10[%223, %c0_82, %c0_83], %226 {strides = array<i32>} : memref<8x8x128xf32, #tpu.memory_space<vmem>>, vector<1x8x128xf32>,
    %c8_i32 = arith.constant 8 : i32
    %c0_84 = arith.constant 0 : index
    %c0_85 = arith.constant 0 : index
    %227 = vector.load %arg11[%c0_84, %c0_85] : memref<8x128xf32, #tpu.memory_space<vmem>>, vector<8x128xf32>
    tpu.vector_store %arg11[%c0_84, %c0_85], %208 {strides = array<i32>} : memref<8x128xf32, #tpu.memory_space<vmem>>, vector<8x128xf32>,
    return
  }
  func.func @transform_0(%arg0: i32) -> (i32, i32, i32) {
    %c0_i32 = arith.constant 0 : i32
    %c0_i32_0 = arith.constant 0 : i32
    %c0_i32_1 = arith.constant 0 : i32
    return %arg0, %c0_i32, %c0_i32_0 : i32, i32, i32
  }
  func.func @transform_1(%arg0: i32) -> (i32, i32) {
    %c0_i32 = arith.constant 0 : i32
    %c0_i32_0 = arith.constant 0 : i32
    %c0_i32_1 = arith.constant 0 : i32
    return %c0_i32, %c0_i32_0 : i32, i32
  }
  func.func @transform_2(%arg0: i32) -> (i32, i32) {
    %c0_i32 = arith.constant 0 : i32
    %c0_i32_0 = arith.constant 0 : i32
    %c0_i32_1 = arith.constant 0 : i32
    return %c0_i32, %c0_i32_0 : i32, i32
  }
  func.func @transform_3(%arg0: i32) -> (i32, i32) {
    %c0_i32 = arith.constant 0 : i32
    %c0_i32_0 = arith.constant 0 : i32
    %c0_i32_1 = arith.constant 0 : i32
    return %c0_i32, %c0_i32_0 : i32, i32
  }
  func.func @transform_4(%arg0: i32) -> (i32, i32) {
    %c0_i32 = arith.constant 0 : i32
    %c0_i32_0 = arith.constant 0 : i32
    %c0_i32_1 = arith.constant 0 : i32
    return %c0_i32, %c0_i32_0 : i32, i32
  }
  func.func @transform_5(%arg0: i32) -> (i32, i32) {
    %c0_i32 = arith.constant 0 : i32
    %c0_i32_0 = arith.constant 0 : i32
    %c0_i32_1 = arith.constant 0 : i32
    return %c0_i32, %c0_i32_0 : i32, i32
  }
  func.func @transform_6(%arg0: i32) -> (i32, i32) {
    %c0_i32 = arith.constant 0 : i32
    %c0_i32_0 = arith.constant 0 : i32
    %c0_i32_1 = arith.constant 0 : i32
    return %c0_i32, %c0_i32_0 : i32, i32
  }
  func.func @transform_7(%arg0: i32) -> (i32, i32) {
    %c0_i32 = arith.constant 0 : i32
    %c0_i32_0 = arith.constant 0 : i32
    %c0_i32_1 = arith.constant 0 : i32
    return %c0_i32, %c0_i32_0 : i32, i32
  }
  func.func @transform_8(%arg0: i32) -> (i32, i32) {
    %c0_i32 = arith.constant 0 : i32
    %c0_i32_0 = arith.constant 0 : i32
    %c0_i32_1 = arith.constant 0 : i32
    return %c0_i32, %c0_i32_0 : i32, i32
  }
  func.func @transform_9(%arg0: i32) -> (i32, i32, i32) {
    %c0_i32 = arith.constant 0 : i32
    %c0_i32_0 = arith.constant 0 : i32
    %c0_i32_1 = arith.constant 0 : i32
    return %arg0, %c0_i32, %c0_i32_0 : i32, i32, i32
  }
  func.func @transform_10(%arg0: i32) -> (i32, i32) {
    %c0_i32 = arith.constant 0 : i32
    %c0_i32_0 = arith.constant 0 : i32
    %c0_i32_1 = arith.constant 0 : i32
    return %c0_i32, %c0_i32_0 : i32, i32
  }
}

</mosaic_0001>

<bundles_post_ra>
// kernel: tpu_custom_call.1
= control target key start
LH: loop header
LB: loop body
LE: loop exit
PB: predicated region body
PF: predicated region fallthrough
CT: control target
= control target key end

     0   :  { %16 = vsyncpa [#allocation4], 0  ;;  %s3216_s0 = inlined_call_operand.hbm [shape: bf16[8,8,128], index: 0, kind: input, shape index: {}]   ;;  %s3217_s1 = inlined_call_operand.hbm [shape: bf16[8,128], index: 1, kind: input, shape index: {}]   ;;  %s3218_s2 = inlined_call_operand.hbm [shape: f32[8,128], index: 2, kind: input, shape index: {}]   ;;  %s3219_s3 = inlined_call_operand.hbm [shape: bf16[128,256], index: 3, kind: input, shape index: {}]   ;;  %s3220_s4 = inlined_call_operand.hbm [shape: bf16[128,256], index: 4, kind: input, shape index: {}]   ;;  %s3221_s5 = inlined_call_operand.hbm [shape: bf16[128,256], index: 5, kind: input, shape index: {}]   ;;  %s3222_s6 = inlined_call_operand.vmem [shape: f32[1,256], index: 6, kind: input, shape index: {}]   ;;  %s3223_s7 = inlined_call_operand.hbm [shape: bf16[256,128], index: 7, kind: input, shape index: {}]   ;;  %s3224_s8 = inlined_call_operand.vmem [shape: f32[1,128], index: 8, kind: input, shape index: {}]   ;;  %s3225_s9 = inlined_call_operand.hbm [shape: f32[8,8,128], index: 9, kind: output, shape index: {0}]   ;;  %s3226_s10 = inlined_call_operand.hbm [shape: f32[8,128], index: 10, kind: output, shape index: {1}]  }
   0x1   :  { %17 = vsyncpa [#allocation7], 0 }
   0x2   :  { %18 = vsyncpa [#allocation10], 0 }
   0x3   :  { %19 = vsyncpa [#allocation13], 0 }
   0x4   :  { %20 = vsyncpa [#allocation5], 0 }
   0x5   :  { %21 = vsyncpa [#allocation17], 0  ;;  %s2411_s13 = smov [#allocation6]   ;;  %s2412_s15 = smov [#allocation9]  }
   0x6   :  { %s40_s14 = sshll.u32 %s2411_s13, 4  ;;  %s59_s16 = sshll.u32 %s2412_s15, 4  ;;  %s41_s14 = int_to_ptr.vmem [resolvable:$true] %s40_s14  ;;  %s2480_s16 = int_to_ptr.vmem [resolvable:$true] %s59_s16 }
   0x7   :  { %s2201_s19 = scalar_lea.hbm %s3217_s1, 64 }
   0x8   :  { %p2202_p0 = scmp.ne.s32.totalorder %s3217_s1, %s2201_s19  ;;  %p2205_p1 = scmp.lt.u32.totalorder %s2201_s19, %s3217_s1 }
   0xa   :  { %p2207_p2 = pnand %p2205_p1, %p2202_p0 }
   0xc   :  { %2210 = shalt.err (!%p2207_p2)
}
   0xd   :  { %s2211_s24 = scalar_lea.vmem %s41_s14, 64  ;;  %p2216_p4 = scmp.lt.s32.totalorder %s41_s14, %s41_s14 }
   0xe   :  { %p2212_p3 = scmp.ne.s32.totalorder %s41_s14, %s2211_s24  ;;  %p2217_p5 = scmp.lt.s32.totalorder %s2211_s24, %s2211_s24 }
  0x10   :  { %p2218_p6 = por %p2217_p5, %p2216_p4 }
  0x12   :  { %p2219_p7 = pnand %p2218_p6, %p2212_p3 }
  0x14   :  { %2222 = shalt.err (!%p2219_p7)
}
  0x15   :  { %43 = dma.hbm_to_vmem [thread:$0]  %s3217_s1, 64, %s41_s14, [#allocation7]  }
  0x16   :  { %s2223_s29 = scalar_lea.hbm %s3219_s3, 2048 }
  0x17   :  { %p2224_p8 = scmp.ne.s32.totalorder %s3219_s3, %s2223_s29  ;;  %p2227_p9 = scmp.lt.u32.totalorder %s2223_s29, %s3219_s3 }
  0x19   :  { %p2229_p10 = pnand %p2227_p9, %p2224_p8 }
  0x1b   :  { %2232 = shalt.err (!%p2229_p10)
}
  0x1c   :  { %s2233_s15 = scalar_lea.vmem %s2480_s16, 2048  ;;  %p2238_p12 = scmp.lt.s32.totalorder %s2480_s16, %s2480_s16 }
  0x1d   :  { %p2234_p11 = scmp.ne.s32.totalorder %s2480_s16, %s2233_s15  ;;  %p2239_p13 = scmp.lt.s32.totalorder %s2233_s15, %s2233_s15 }
  0x1f   :  { %p2240_p0 = por %p2239_p13, %p2238_p12 }
  0x21   :  { %p2241_p1 = pnand %p2240_p0, %p2234_p11 }
  0x23   :  { %2244 = shalt.err (!%p2241_p1)
}
  0x24   :  { %s2413_s1 = smov 128   ;;  %s2414_s14 = smov 8  }
  0x25   :  { %65 = dma.hbm_to_vmem [thread:$0]  %s3219_s3, 2048, %s2480_s16, [#allocation10], %s2413_s1, %s2413_s1, %s2414_s14  }
  0x26   :  { %s2415_s19 = smov [#allocation12]   ;;  %s2416_s21 = smov [#allocation3]  }
  0x27   :  { %s83_s20 = sshll.u32 %s2415_s19, 4  ;;  %s27_s22 = sshll.u32 %s2416_s21, 4  ;;  %s84_s20 = int_to_ptr.vmem [resolvable:$true] %s83_s20  ;;  %s2514_s22 = int_to_ptr.vmem [resolvable:$true] %s27_s22 }
  0x28   :  { %s2245_s25 = scalar_lea.hbm %s3221_s5, 2048 }
  0x29   :  { %p2246_p2 = scmp.ne.s32.totalorder %s3221_s5, %s2245_s25  ;;  %p2249_p3 = scmp.lt.u32.totalorder %s2245_s25, %s3221_s5 }
  0x2b   :  { %p2251_p4 = pnand %p2249_p3, %p2246_p2 }
  0x2d   :  { %2254 = shalt.err (!%p2251_p4)
}
  0x2e   :  { %s2255_s3 = scalar_lea.vmem %s84_s20, 2048  ;;  %p2260_p6 = scmp.lt.s32.totalorder %s84_s20, %s84_s20 }
  0x2f   :  { %p2256_p5 = scmp.ne.s32.totalorder %s84_s20, %s2255_s3  ;;  %p2261_p7 = scmp.lt.s32.totalorder %s2255_s3, %s2255_s3 }
  0x31   :  { %p2262_p8 = por %p2261_p7, %p2260_p6 }
  0x33   :  { %p2263_p9 = pnand %p2262_p8, %p2256_p5 }
  0x35   :  { %2266 = shalt.err (!%p2263_p9)
}
  0x36   :  { %89 = dma.hbm_to_vmem [thread:$0]  %s3221_s5, 2048, %s84_s20, [#allocation13], %s2413_s1, %s2413_s1, %s2414_s14  }
  0x37   :  { %s2267_s13 = scalar_lea.hbm %s3216_s0, 512 }
  0x38   :  { %p2268_p10 = scmp.ne.s32.totalorder %s3216_s0, %s2267_s13  ;;  %p2271_p11 = scmp.lt.u32.totalorder %s2267_s13, %s3216_s0 }
  0x3a   :  { %p2273_p12 = pnand %p2271_p11, %p2268_p10 }
  0x3c   :  { %2276 = shalt.err (!%p2273_p12)
}
  0x3d   :  { %s2277_s21 = scalar_lea.vmem %s2514_s22, 512  ;;  %p2282_p0 = scmp.lt.s32.totalorder %s2514_s22, %s2514_s22 }
  0x3e   :  { %p2278_p13 = scmp.ne.s32.totalorder %s2514_s22, %s2277_s21  ;;  %p2283_p1 = scmp.lt.s32.totalorder %s2277_s21, %s2277_s21 }
  0x40   :  { %p2284_p2 = por %p2283_p1, %p2282_p0 }
  0x42   :  { %p2285_p3 = pnand %p2284_p2, %p2278_p13 }
  0x44   :  { %2288 = shalt.err (!%p2285_p3)
}
  0x45   :  { %s2417_s5 = smov 64   ;;  %s2418_s20 = smov 4  }
  0x46   :  { %33 = dma.hbm_to_vmem [thread:$0]  %s3216_s0, 512, %s2514_s22, [#allocation4], %s2417_s5, %s2417_s5, %s2418_s20  }
  0x47   :  { %s2419_s25 = smov [#allocation8]   ;;  %s2420_s27 = smov [#allocation11]  }
  0x48   :  { %s50_s26 = sshll.u32 %s2419_s25, 4  ;;  %s71_s28 = sshll.u32 %s2420_s27, 4  ;;  %s51_s26 = int_to_ptr.vmem [resolvable:$true] %s50_s26  ;;  %s2551_s28 = int_to_ptr.vmem [resolvable:$true] %s71_s28 }
  0x49   :  { %s2289_s16 = scalar_lea.hbm %s3218_s2, 128 }
  0x4a   :  { %p2290_p4 = scmp.ne.s32.totalorder %s3218_s2, %s2289_s16  ;;  %p2293_p5 = scmp.lt.u32.totalorder %s2289_s16, %s3218_s2 }
  0x4c   :  { %p2295_p6 = pnand %p2293_p5, %p2290_p4 }
  0x4e   :  { %2298 = shalt.err (!%p2295_p6)
}
  0x4f   :  { %s2299_s0 = scalar_lea.vmem %s51_s26, 128  ;;  %p2304_p8 = scmp.lt.s32.totalorder %s51_s26, %s51_s26 }
  0x50   :  { %p2300_p7 = scmp.ne.s32.totalorder %s51_s26, %s2299_s0  ;;  %p2305_p9 = scmp.lt.s32.totalorder %s2299_s0, %s2299_s0 }
  0x52   :  { %p2306_p10 = por %p2305_p9, %p2304_p8 }
  0x54   :  { %p2307_p11 = pnand %p2306_p10, %p2300_p7 }
  0x56   :  { %2310 = shalt.err (!%p2307_p11)
}
  0x57   :  { %53 = dma.hbm_to_vmem [thread:$0]  %s3218_s2, 128, %s51_s26, [#allocation7]  }
  0x58   :  { %s2311_s19 = scalar_lea.hbm %s3220_s4, 2048 }
  0x59   :  { %p2312_p12 = scmp.ne.s32.totalorder %s3220_s4, %s2311_s19  ;;  %p2315_p13 = scmp.lt.u32.totalorder %s2311_s19, %s3220_s4 }
  0x5b   :  { %p2317_p0 = pnand %p2315_p13, %p2312_p12 }
  0x5d   :  { %2320 = shalt.err (!%p2317_p0)
}
  0x5e   :  { %s2321_s27 = scalar_lea.vmem %s2551_s28, 2048  ;;  %p2326_p2 = scmp.lt.s32.totalorder %s2551_s28, %s2551_s28 }
  0x5f   :  { %p2322_p1 = scmp.ne.s32.totalorder %s2551_s28, %s2321_s27  ;;  %p2327_p3 = scmp.lt.s32.totalorder %s2321_s27, %s2321_s27 }
  0x61   :  { %p2328_p4 = por %p2327_p3, %p2326_p2 }
  0x63   :  { %p2329_p5 = pnand %p2328_p4, %p2322_p1 }
  0x65   :  { %2332 = shalt.err (!%p2329_p5)
}
  0x66   :  { %77 = dma.hbm_to_vmem [thread:$0]  %s3220_s4, 2048, %s2551_s28, [#allocation10], %s2413_s1, %s2413_s1, %s2414_s14  }
  0x67   :  { %s2421_s29 = smov [#allocation14]   ;;  %s2333_s11 = scalar_lea.hbm %s3223_s7, 2048 }
  0x68   :  { %s97_s3 = sshll.u32 %s2421_s29, 4  ;;  %p2334_p6 = scmp.ne.s32.totalorder %s3223_s7, %s2333_s11  ;;  %s98_s3 = int_to_ptr.vmem [resolvable:$true] %s97_s3 }
  0x69   :  { %p2337_p7 = scmp.lt.u32.totalorder %s2333_s11, %s3223_s7 }
  0x6b   :  { %p2339_p8 = pnand %p2337_p7, %p2334_p6 }
  0x6d   :  { %2342 = shalt.err (!%p2339_p8)
}
  0x6e   :  { %s2343_s15 = scalar_lea.vmem %s98_s3, 2048  ;;  %p2348_p10 = scmp.lt.s32.totalorder %s98_s3, %s98_s3 }
  0x6f   :  { %p2344_p9 = scmp.ne.s32.totalorder %s98_s3, %s2343_s15  ;;  %p2349_p11 = scmp.lt.s32.totalorder %s2343_s15, %s2343_s15 }
  0x71   :  { %p2350_p12 = por %p2349_p11, %p2348_p10 }
  0x73   :  { %p2351_p13 = pnand %p2350_p12, %p2344_p9 }
  0x75   :  { %2354 = shalt.err (!%p2351_p13)
}
  0x76   :  { %103 = dma.hbm_to_vmem [thread:$0]  %s3223_s7, 2048, %s98_s3, [#allocation13], %s2417_s5, %s2417_s5, %s2418_s20  }
  0x77   :  { %2399 = dma.done.wait [#allocation4], 512  }
  0x78   :  { %2400 = vsyncadd [#allocation4], 4294966784 }
  0x79   :  { %2401 = dma.done.wait [#allocation7], 192  }
  0x7a   :  { %2402 = vsyncadd [#allocation7], 4294967104 }
  0x7b   :  { %2403 = dma.done.wait [#allocation10], 4096  }
  0x7c   :  { %2404 = vsyncadd [#allocation10], 4294963200 }
  0x7d   :  { %2405 = dma.done.wait [#allocation13], 4096  }
  0x7e   :  { %2406 = vsyncadd [#allocation13], 4294963200  ;;  %v3227_v0 = vmov 0   ;;  %v2033_v1 = vld [vmem:[#allocation9 + $0x4] ss:$8 sps:$4 sm:$0xff]   ;;  %v284_v39 = vld [vmem:[#allocation8] sm:$0xff] }
  0x7f   :  { %273 = vmatprep.mubr.bf16.mxu0 %v3227_v0  ;;  %474 = vmatprep.mubr.bf16.mxu1 %v3227_v0  ;;  %v2035_v2 = vld [vmem:[#allocation9] ss:$8 sps:$4 sm:$0xff]   ;;  %v2036_v3 = vld [vmem:[#allocation9 + $0x14] ss:$8 sps:$4 sm:$0xff]   ;;  %v2038_v4 = vld [vmem:[#allocation9 + $0x10] ss:$8 sps:$4 sm:$0xff]   ;;  %v361_v43 = vpack.c.bf16 %v284_v39, %v284_v39 }
  0x80   :  { %241 = vmatprep.subr.bf16.mxu0 %v2033_v1  ;;  %v2039_v5 = vld [vmem:[#allocation9 + $0x24] ss:$8 sps:$4 sm:$0xff]   ;;  %v2041_v6 = vld [vmem:[#allocation9 + $0x20] ss:$8 sps:$4 sm:$0xff]   ;;  %v2042_v7 = vld [vmem:[#allocation9 + $0x34] ss:$8 sps:$4 sm:$0xff]  }
  0x81   :  { %242 = vmatpush1.bf16.msra.mxu0 %v2035_v2  ;;  %v2044_v8 = vld [vmem:[#allocation9 + $0x30] ss:$8 sps:$4 sm:$0xff]   ;;  %v2602_v9 = vld [vmem:[#allocation12 + $0x4] ss:$8 sps:$4 sm:$0xff]   ;;  %v2604_v10 = vld [vmem:[#allocation12] ss:$8 sps:$4 sm:$0xff]  }
  0x82   :  { %243 = vmatprep.subr.bf16.mxu0 %v2036_v3  ;;  %v2045_v11 = vld [vmem:[#allocation9 + $0x44] ss:$8 sps:$4 sm:$0xff]   ;;  %442 = vmatprep.subr.bf16.mxu1 %v2602_v9  ;;  %v2047_v12 = vld [vmem:[#allocation9 + $0x40] ss:$8 sps:$4 sm:$0xff]   ;;  %v2608_v13 = vld [vmem:[#allocation12 + $0x14] ss:$8 sps:$4 sm:$0xff]  }
  0x83   :  { %443 = vmatpush1.bf16.msra.mxu1 %v2604_v10  ;;  %v2610_v14 = vld [vmem:[#allocation12 + $0x10] ss:$8 sps:$4 sm:$0xff]   ;;  %v2048_v15 = vld [vmem:[#allocation9 + $0x54] ss:$8 sps:$4 sm:$0xff]   ;;  %v2613_v16 = vld [vmem:[#allocation12 + $0x24] ss:$8 sps:$4 sm:$0xff]  }
  0x84   :  { %444 = vmatprep.subr.bf16.mxu1 %v2608_v13  ;;  %v2616_v17 = vld [vmem:[#allocation12 + $0x20] ss:$8 sps:$4 sm:$0xff]   ;;  %v2050_v18 = vld [vmem:[#allocation9 + $0x50] ss:$8 sps:$4 sm:$0xff]   ;;  %v2619_v19 = vld [vmem:[#allocation12 + $0x34] ss:$8 sps:$4 sm:$0xff]  }
  0x85   :  { %244 = vmatpush1.bf16.msra.mxu0 %v2038_v4  ;;  %v2051_v20 = vld [vmem:[#allocation9 + $0x64] ss:$8 sps:$4 sm:$0xff]   ;;  %v2053_v21 = vld [vmem:[#allocation9 + $0x60] ss:$8 sps:$4 sm:$0xff]   ;;  %v2622_v22 = vld [vmem:[#allocation12 + $0x30] ss:$8 sps:$4 sm:$0xff]  }
  0x86   :  { %245 = vmatprep.subr.bf16.mxu0 %v2039_v5  ;;  %v2625_v23 = vld [vmem:[#allocation12 + $0x44] ss:$8 sps:$4 sm:$0xff]   ;;  %v2054_v24 = vld [vmem:[#allocation9 + $0x74] ss:$8 sps:$4 sm:$0xff]   ;;  %v2628_v25 = vld [vmem:[#allocation12 + $0x40] ss:$8 sps:$4 sm:$0xff]  }
  0x87   :  { %445 = vmatpush1.bf16.msra.mxu1 %v2610_v14  ;;  %v2056_v26 = vld [vmem:[#allocation9 + $0x70] ss:$8 sps:$4 sm:$0xff]   ;;  %v2631_v27 = vld [vmem:[#allocation12 + $0x54] ss:$8 sps:$4 sm:$0xff]   ;;  %v2633_v28 = vld [vmem:[#allocation11 + $0x4] ss:$8 sps:$4 sm:$0xff]  }
  0x88   :  { %446 = vmatprep.subr.bf16.mxu1 %v2613_v16  ;;  %v132_v29 = vld [vmem:[#allocation6] sm:$0xf]  ;;  %v2635_v30 = vld [vmem:[#allocation11] ss:$8 sps:$4 sm:$0xff]   ;;  %v2638_v31 = vld [vmem:[#allocation12 + $0x50] ss:$8 sps:$4 sm:$0xff]  }
  0x89   :  { %246 = vmatpush1.bf16.msra.mxu0 %v2041_v6  ;;  %3245 = vst [vmem:[#allocation24_spill] sm:$0xff] %v2638_v31  ;;  %v2641_v32 = vld [vmem:[#allocation12 + $0x64] ss:$8 sps:$4 sm:$0xff]   ;;  %v2644_v33 = vld [vmem:[#allocation11 + $0x14] ss:$8 sps:$4 sm:$0xff]  }
  0x8a   :  { %247 = vmatprep.subr.bf16.mxu0 %v2042_v7  ;;  %3246 = vst [vmem:[#allocation25_spill] sm:$0xff] %v2641_v32  ;;  %v2646_v34 = vld [vmem:[#allocation12 + $0x60] ss:$8 sps:$4 sm:$0xff]   ;;  %v2648_v35 = vld [vmem:[#allocation11 + $0x10] ss:$8 sps:$4 sm:$0xff]  }
  0x8b   :  { %447 = vmatpush1.bf16.msra.mxu1 %v2616_v17  ;;  %3247 = vst [vmem:[#allocation26_spill] sm:$0xff] %v2646_v34  ;;  %v2650_v36 = vld [vmem:[#allocation12 + $0x74] ss:$8 sps:$4 sm:$0xff]   ;;  %v2652_v37 = vld [vmem:[#allocation11 + $0x24] ss:$8 sps:$4 sm:$0xff]  }
  0x8c   :  { %448 = vmatprep.subr.bf16.mxu1 %v2619_v19  ;;  %3248 = vst [vmem:[#allocation27_spill] sm:$0xff] %v2650_v36  ;;  %v2658_v38 = vld [vmem:[#allocation12 + $0x70] ss:$8 sps:$4 sm:$0xff]   ;;  %v2661_v40 = vld [vmem:[#allocation11 + $0x20] ss:$8 sps:$4 sm:$0xff]  }
  0x8d   :  { %248 = vmatpush1.bf16.msra.mxu0 %v2044_v8  ;;  %3249 = vst [vmem:[#allocation28_spill] sm:$0xff] %v2658_v38  ;;  %v2663_v41 = vld [vmem:[#allocation11 + $0x34] ss:$8 sps:$4 sm:$0xff]   ;;  %v2669_v42 = vld [vmem:[#allocation11 + $0x30] ss:$8 sps:$4 sm:$0xff]   ;;  %v2716_v53 = vld [vmem:[#allocation14 + $0x40] sm:$0xff]  }
  0x8e   :  { %249 = vmatprep.subr.bf16.mxu0 %v2045_v11  ;;  %v2674_v44 = vld [vmem:[#allocation11 + $0x44] ss:$8 sps:$4 sm:$0xff]   ;;  %v2677_v45 = vld [vmem:[#allocation11 + $0x40] ss:$8 sps:$4 sm:$0xff]   ;;  %v2680_v46 = vld [vmem:[#allocation11 + $0x54] ss:$8 sps:$4 sm:$0xff]  }
  0x8f   :  { %449 = vmatpush1.bf16.msra.mxu1 %v2622_v22  ;;  %v2683_v47 = vld [vmem:[#allocation11 + $0x50] ss:$8 sps:$4 sm:$0xff]   ;;  %v2686_v48 = vld [vmem:[#allocation11 + $0x64] ss:$8 sps:$4 sm:$0xff]   ;;  %v2689_v49 = vld [vmem:[#allocation11 + $0x60] ss:$8 sps:$4 sm:$0xff]  }
  0x90   :  { %450 = vmatprep.subr.bf16.mxu1 %v2625_v23  ;;  %v2692_v50 = vld [vmem:[#allocation11 + $0x74] ss:$8 sps:$4 sm:$0xff]   ;;  %v2695_v51 = vld [vmem:[#allocation11 + $0x70] ss:$8 sps:$4 sm:$0xff]   ;;  %3250 = vst [vmem:[#allocation29_spill] sm:$0xff] %v2716_v53  ;;  %v2718_v54 = vld [vmem:[#allocation14] sm:$0xff]  }
  0x91   :  { %250 = vmatpush1.bf16.msra.mxu0 %v2047_v12  ;;  %v360_v52 = vld [vmem:[#allocation3] sm:$0xf]  ;;  %v2720_v55 = vld [vmem:[#allocation14 + $0x48] sm:$0xff]   ;;  %v2734_v59 = vld [vmem:[#allocation14 + $0x58] sm:$0xff]  }
  0x92   :  { %251 = vmatprep.subr.bf16.mxu0 %v2048_v15  ;;  %v2725_v56 = vld [vmem:[#allocation14 + $0x8] sm:$0xff]   ;;  %v2728_v57 = vld [vmem:[#allocation14 + $0x50] sm:$0xff]   ;;  %v2737_v60 = vld [vmem:[#allocation14 + $0x18] sm:$0xff]  }
  0x93   :  { %451 = vmatpush1.bf16.msra.mxu1 %v2628_v25  ;;  %v2731_v58 = vld [vmem:[#allocation14 + $0x10] sm:$0xff]   ;;  %v2740_v61 = vld [vmem:[#allocation14 + $0x60] sm:$0xff]   ;;  %v2746_v63 = vld [vmem:[#allocation14 + $0x68] sm:$0xff]  }
  0x94   :  { %452 = vmatprep.subr.bf16.mxu1 %v2631_v27  ;;  %v2743_v62 = vld [vmem:[#allocation14 + $0x20] sm:$0xff]   ;;  %v2749_v1 = vld [vmem:[#allocation14 + $0x28] sm:$0xff]   ;;  %v2753_v2 = vld [vmem:[#allocation14 + $0x70] sm:$0xff]  }
  0x95   :  { %252 = vmatpush1.bf16.msra.mxu0 %v2050_v18  ;;  %v2755_v3 = vld [vmem:[#allocation14 + $0x30] sm:$0xff]   ;;  %v2759_v4 = vld [vmem:[#allocation14 + $0x78] sm:$0xff]  }
  0x96   :  { %253 = vmatprep.subr.bf16.mxu0 %v2051_v20  ;;  %v2761_v5 = vld [vmem:[#allocation14 + $0x38] sm:$0xff]  }
  0x97   :  { %453 = vmatpush1.bf16.msra.mxu1 %v2638_v31 }
  0x98   :  { %454 = vmatprep.subr.bf16.mxu1 %v2641_v32 }
  0x99   :  { %254 = vmatpush1.bf16.msra.mxu0 %v2053_v21  ;;  %v151_v21 = vlaneseq }
  0x9a   :  { %255 = vmatprep.subr.bf16.mxu0 %v2054_v24 }
  0x9b   :  { %455 = vmatpush1.bf16.msra.mxu1 %v2646_v34  ;;  %v152_v24 = vshrl.u32 %v151_v21, 7 }
  0x9c   :  { %456 = vmatprep.subr.bf16.mxu1 %v2650_v36 }
  0x9d   :  { %256 = vmatpush1.bf16.msra.mxu0 %v2056_v26  ;;  %v153_v26 = vsub.s32 0, %v152_v24  ;;  %v157_v39 = vsub.s32 1, %v152_v24 }
  0x9e   :  { %563 = vmatprep.subr.bf16.mxu0 %v2633_v28 }
  0x9f   :  { %457 = vmatpush1.bf16.msra.mxu1 %v2658_v38 }
  0xa0   :  { %274 = vmatmul.mubr.bf16.vlgmr.msra.gmra.mrb[0].mxu0 %v132_v29  ;;  %1843 = vmatprep.subr.bf16.mxu1 %v2716_v53  ;;  %v149_v29 = vld [vmem:[%s3222_s6] sm:$0x3] }
  0xa1   :  { %564 = vmatpush1.bf16.msra.mxu0 %v2635_v30  ;;  %595 = vmatprep.mubr.bf16.mxu0 %v3227_v0 }
  0xa2   :  { %565 = vmatprep.subr.bf16.mxu0 %v2644_v33  ;;  %475 = vmatmul.mubr.bf16.vlgmr.msra.gmra.mrb[0].mxu1 %v361_v43  ;;  %v154_v43 = vrot.slane %v149_v29, %v153_v26 }
  0xa3   :  { %1844 = vmatpush3.bf16.msra.mxu1 %v2718_v54 }
  0xa4   :  { %1845 = vmatprep.subr.bf16.mxu1 %v2720_v55 }
  0xa5   :  { %566 = vmatpush1.bf16.msra.mxu0 %v2648_v35 }
  0xa6   :  { %567 = vmatprep.subr.bf16.mxu0 %v2652_v37 }
  0xa7   :  { %1846 = vmatpush3.bf16.msra.mxu1 %v2725_v56 }
  0xa8   :  { %1847 = vmatprep.subr.bf16.mxu1 %v2728_v57 }
  0xa9   :  { %568 = vmatpush1.bf16.msra.mxu0 %v2661_v40 }
  0xaa   :  { %569 = vmatprep.subr.bf16.mxu0 %v2663_v41 }
  0xab   :  { %1848 = vmatpush3.bf16.msra.mxu1 %v2731_v58 }
  0xac   :  { %1849 = vmatprep.subr.bf16.mxu1 %v2734_v59 }
  0xad   :  { %570 = vmatpush1.bf16.msra.mxu0 %v2669_v42 }
  0xae   :  { %571 = vmatprep.subr.bf16.mxu0 %v2674_v44 }
  0xaf   :  { %1850 = vmatpush3.bf16.msra.mxu1 %v2737_v60 }
  0xb0   :  { %1851 = vmatprep.subr.bf16.mxu1 %v2740_v61 }
  0xb1   :  { %572 = vmatpush1.bf16.msra.mxu0 %v2677_v45 }
  0xb2   :  { %573 = vmatprep.subr.bf16.mxu0 %v2680_v46 }
  0xb3   :  { %1852 = vmatpush3.bf16.msra.mxu1 %v2743_v62 }
  0xb4   :  { %1853 = vmatprep.subr.bf16.mxu1 %v2746_v63 }
  0xb5   :  { %574 = vmatpush1.bf16.msra.mxu0 %v2683_v47 }
  0xb6   :  { %575 = vmatprep.subr.bf16.mxu0 %v2686_v48 }
  0xb7   :  { %1854 = vmatpush3.bf16.msra.mxu1 %v2749_v1 }
  0xb8   :  { %1855 = vmatprep.subr.bf16.mxu1 %v2753_v2 }
  0xb9   :  { %576 = vmatpush1.bf16.msra.mxu0 %v2689_v49 }
  0xba   :  { %577 = vmatprep.subr.bf16.mxu0 %v2692_v50 }
  0xbb   :  { %1856 = vmatpush3.bf16.msra.mxu1 %v2755_v3 }
  0xbc   :  { %1857 = vmatprep.subr.bf16.mxu1 %v2759_v4 }
  0xbd   :  { %578 = vmatpush1.bf16.msra.mxu0 %v2695_v51 }
  0xbe   :  { %758 = vmatprep.subr.bf16.mxu0 %v2602_v9 }
  0xbf   :  { %1858 = vmatpush3.bf16.msra.mxu1 %v2761_v5 }
  0xc0   :  { %596 = vmatmul.mubr.bf16.vlgmr.msra.gmra.mrb[4].mxu0 %v360_v52  ;;  %799 = vmatprep.subr.bf16.mxu1 %v2633_v28  ;;  %v158_v52 = vrot.slane %v149_v29, %v157_v39  ;;  %v2828_v29 = vld [vmem:[%s3224_s8] ss:$0 sm:$0xff] }
  0xc1   :  { %759 = vmatpush1.bf16.msra.mxu0 %v2604_v10  ;;  %790 = vmatprep.mubr.bf16.mxu0 %v3227_v0 }
  0xc2   :  { %760 = vmatprep.subr.bf16.mxu0 %v2608_v13 }
  0xc5   :  { %761 = vmatpush1.bf16.msra.mxu0 %v2610_v14 }
  0xc6   :  { %762 = vmatprep.subr.bf16.mxu0 %v2613_v16 }
  0xc9   :  { %763 = vmatpush1.bf16.msra.mxu0 %v2616_v17 }
  0xca   :  { %764 = vmatprep.subr.bf16.mxu0 %v2619_v19 }
  0xcd   :  { %765 = vmatpush1.bf16.msra.mxu0 %v2622_v22 }
  0xce   :  { %766 = vmatprep.subr.bf16.mxu0 %v2625_v23 }
  0xd1   :  { %767 = vmatpush1.bf16.msra.mxu0 %v2628_v25 }
  0xd2   :  { %768 = vmatprep.subr.bf16.mxu0 %v2631_v27 }
  0xd5   :  { %769 = vmatpush1.bf16.msra.mxu0 %v2638_v31 }
  0xd6   :  { %770 = vmatprep.subr.bf16.mxu0 %v2641_v32 }
  0xd9   :  { %771 = vmatpush1.bf16.msra.mxu0 %v2646_v34 }
  0xda   :  { %772 = vmatprep.subr.bf16.mxu0 %v2650_v36 }
  0xdd   :  { %773 = vmatpush1.bf16.msra.mxu0 %v2658_v38 }
  0xde   :  { %1865 = vmatprep.subr.bf16.mxu0 %v2716_v53 }
 0x173   :  { %v275_v6 = vpop.f32.mrb[0].mxu0 }
 0x174   :  { %v277_v7 = vpop.f32.mrb[1].mxu0  ;;  %v2769_v53 = vadd.f32 %v275_v6, %v154_v43  ;;  %v3256_v6 = vld [vmem:[#allocation28_spill] sm:$0xff] }
 0x175   :  { %v279_v8 = vpop.f32.mrb[2].mxu0  ;;  %v476_v12 = vpop.f32.mrb[0].mxu1 }
 0x176   :  { %v280_v11 = vpop.f32.mrb[3].mxu0  ;;  %v478_v15 = vpop.f32.mrb[1].mxu1 }
 0x177   :  { %v480_v18 = vpop.f32.mrb[2].mxu1  ;;  %v2771_v11 = vadd.f32 %v277_v7, %v158_v52  ;;  %v3257_v7 = vld [vmem:[#allocation29_spill] sm:$0xff] }
 0x178   :  { %v481_v20 = vpop.f32.mrb[3].mxu1 }
 0x193   :  { %v597_v0 = vpop.f32.mrb[4].mxu0 }
 0x194   :  { %v598_v38 = vadd.f32 %v597_v0, %v476_v12  ;;  %v599_v8 = vpop.f32.mrb[5].mxu0  ;;  %v3251_v0 = vmov 0  }
 0x195   :  { %v600_v36 = vadd.f32 %v599_v8, %v478_v15  ;;  %v601_v18 = vpop.f32.mrb[6].mxu0 }
 0x196   :  { %v604_v20 = vadd.f32 %v598_v38, %v2769_v53  ;;  %v602_v21 = vpop.f32.mrb[7].mxu0  ;;  %v3255_v38 = vld [vmem:[#allocation27_spill] sm:$0xff] }
 0x197   :  { %v605_v34 = vadd.f32 %v600_v36, %v2771_v11  ;;  %v3254_v36 = vld [vmem:[#allocation26_spill] sm:$0xff] }
 0x198   :  { %v606_v32 = vpack.c.bf16 %v604_v20, %v604_v20 }
 0x199   :  { %v607_v31 = vpack.c.bf16 %v605_v34, %v605_v34  ;;  %v3253_v34 = vld [vmem:[#allocation25_spill] sm:$0xff] }
 0x19a   :  { %791 = vmatmul.mubr.bf16.vlgmr.msra.gmra.mrb[8].mxu0 %v606_v32 }
 0x19b   :  { %736 = vmatprep.mubr.bf16.mxu1 %v607_v31  ;;  %1866 = vmatpush3.bf16.msra.mxu0 %v2718_v54  ;;  %v757_v31 = vld [vmem:[#allocation3 + $0x4] sm:$0xf] }
 0x19c   :  { %737 = vmatmul.mubr.bf16.vlgmr.msra.gmra.mrb[4].mxu1 %v606_v32  ;;  %1867 = vmatprep.subr.bf16.mxu0 %v2720_v55  ;;  %v3252_v32 = vld [vmem:[#allocation24_spill] sm:$0xff] }
 0x19d   :  { %800 = vmatpush1.bf16.msra.mxu1 %v2635_v30  ;;  %831 = vmatprep.mubr.bf16.mxu1 %v3251_v0 }
 0x19e   :  { %801 = vmatprep.subr.bf16.mxu1 %v2644_v33 }
 0x19f   :  { %1868 = vmatpush3.bf16.msra.mxu0 %v2725_v56 }
 0x1a0   :  { %1869 = vmatprep.subr.bf16.mxu0 %v2728_v57 }
 0x1a1   :  { %802 = vmatpush1.bf16.msra.mxu1 %v2648_v35 }
 0x1a2   :  { %803 = vmatprep.subr.bf16.mxu1 %v2652_v37 }
 0x1a3   :  { %1870 = vmatpush3.bf16.msra.mxu0 %v2731_v58 }
 0x1a4   :  { %1871 = vmatprep.subr.bf16.mxu0 %v2734_v59 }
 0x1a5   :  { %804 = vmatpush1.bf16.msra.mxu1 %v2661_v40 }
 0x1a6   :  { %805 = vmatprep.subr.bf16.mxu1 %v2663_v41 }
 0x1a7   :  { %1872 = vmatpush3.bf16.msra.mxu0 %v2737_v60 }
 0x1a8   :  { %1873 = vmatprep.subr.bf16.mxu0 %v2740_v61 }
 0x1a9   :  { %806 = vmatpush1.bf16.msra.mxu1 %v2669_v42 }
 0x1aa   :  { %807 = vmatprep.subr.bf16.mxu1 %v2674_v44 }
 0x1ab   :  { %1874 = vmatpush3.bf16.msra.mxu0 %v2743_v62 }
 0x1ac   :  { %1875 = vmatprep.subr.bf16.mxu0 %v2746_v63 }
 0x1ad   :  { %808 = vmatpush1.bf16.msra.mxu1 %v2677_v45 }
 0x1ae   :  { %809 = vmatprep.subr.bf16.mxu1 %v2680_v46 }
 0x1af   :  { %1876 = vmatpush3.bf16.msra.mxu0 %v2749_v1 }
 0x1b0   :  { %1877 = vmatprep.subr.bf16.mxu0 %v2753_v2 }
 0x1b1   :  { %810 = vmatpush1.bf16.msra.mxu1 %v2683_v47 }
 0x1b2   :  { %811 = vmatprep.subr.bf16.mxu1 %v2686_v48 }
 0x1b3   :  { %1878 = vmatpush3.bf16.msra.mxu0 %v2755_v3 }
 0x1b4   :  { %1879 = vmatprep.subr.bf16.mxu0 %v2759_v4 }
 0x1b5   :  { %812 = vmatpush1.bf16.msra.mxu1 %v2689_v49 }
 0x1b6   :  { %813 = vmatprep.subr.bf16.mxu1 %v2692_v50 }
 0x1b7   :  { %1880 = vmatpush3.bf16.msra.mxu0 %v2761_v5 }
 0x1b8   :  { %940 = vmatprep.subr.bf16.mxu0 %v2633_v28 }
 0x1b9   :  { %814 = vmatpush1.bf16.msra.mxu1 %v2695_v51 }
 0x1ba   :  { %899 = vmatprep.subr.bf16.mxu1 %v2602_v9 }
 0x1bc   :  { %832 = vmatmul.mubr.bf16.vlgmr.msra.gmra.mrb[8].mxu1 %v757_v31 }
 0x1bd   :  { %900 = vmatpush1.bf16.msra.mxu1 %v2604_v10  ;;  %931 = vmatprep.mubr.bf16.mxu1 %v3251_v0 }
 0x1be   :  { %901 = vmatprep.subr.bf16.mxu1 %v2608_v13 }
 0x1c1   :  { %902 = vmatpush1.bf16.msra.mxu1 %v2610_v14 }
 0x1c2   :  { %903 = vmatprep.subr.bf16.mxu1 %v2613_v16 }
 0x1c5   :  { %904 = vmatpush1.bf16.msra.mxu1 %v2616_v17 }
 0x1c6   :  { %905 = vmatprep.subr.bf16.mxu1 %v2619_v19 }
 0x1c9   :  { %906 = vmatpush1.bf16.msra.mxu1 %v2622_v22 }
 0x1ca   :  { %907 = vmatprep.subr.bf16.mxu1 %v2625_v23 }
 0x1cd   :  { %908 = vmatpush1.bf16.msra.mxu1 %v2628_v25 }
 0x1ce   :  { %909 = vmatprep.subr.bf16.mxu1 %v2631_v27 }
 0x1d1   :  { %910 = vmatpush1.bf16.msra.mxu1 %v3252_v32 }
 0x1d2   :  { %911 = vmatprep.subr.bf16.mxu1 %v3253_v34 }
 0x1d5   :  { %912 = vmatpush1.bf16.msra.mxu1 %v3254_v36 }
 0x1d6   :  { %913 = vmatprep.subr.bf16.mxu1 %v3255_v38 }
 0x1d9   :  { %914 = vmatpush1.bf16.msra.mxu1 %v3256_v6 }
 0x1da   :  { %1887 = vmatprep.subr.bf16.mxu1 %v3257_v7 }
 0x26d   :  { %v792_v12 = vpop.f32.mrb[8].mxu0 }
 0x26e   :  { %v794_v15 = vpop.f32.mrb[9].mxu0 }
 0x26f   :  { %v1859_v24 = vpop.f32.mrb[4].mxu1  ;;  %v796_v26 = vpop.f32.mrb[10].mxu0 }
 0x270   :  { %v1860_v39 = vpop.f32.mrb[5].mxu1  ;;  %v797_v43 = vpop.f32.mrb[11].mxu0 }
 0x271   :  { %v1861_v52 = vadd.f32 %v1860_v39, %v1859_v24  ;;  %v1862_v8 = vpop.f32.mrb[6].mxu1 }
 0x272   :  { %v1863_v18 = vpop.f32.mrb[7].mxu1 }
 0x273   :  { %v2831_v20 = vadd.f32 %v1861_v52, %v2828_v29 }
 0x275   :  { %3258 = vst [vmem:[#allocation30_spill] sm:$0xff] %v2831_v20  ;;  %744 = vmax.xlane.f32.xlu0 %v2831_v20 }
 0x28f   :  { %v833_v21 = vpop.f32.mrb[8].mxu1 }
 0x290   :  { %v834_v31 = vadd.f32 %v833_v21, %v792_v12  ;;  %v835_v7 = vpop.f32.mrb[9].mxu1  ;;  %v3264_v12 = vld [vmem:[#allocation29_spill] sm:$0xff] }
 0x291   :  { %v836_v6 = vadd.f32 %v835_v7, %v794_v15  ;;  %v837_v26 = vpop.f32.mrb[10].mxu1  ;;  %v3263_v7 = vld [vmem:[#allocation28_spill] sm:$0xff] }
 0x292   :  { %v840_v38 = vadd.f32 %v834_v31, %v2769_v53  ;;  %v838_v36 = vpop.f32.mrb[11].mxu1 }
 0x293   :  { %v841_v34 = vadd.f32 %v836_v6, %v2771_v11  ;;  %v3260_v36 = vld [vmem:[#allocation25_spill] sm:$0xff]  ;;  %v3262_v6 = vld [vmem:[#allocation27_spill] sm:$0xff] }
 0x294   :  { %v842_v32 = vpack.c.bf16 %v840_v38, %v840_v38  ;;  %v3261_v38 = vld [vmem:[#allocation26_spill] sm:$0xff] }
 0x295   :  { %v843_v43 = vpack.c.bf16 %v841_v34, %v841_v34  ;;  %v3259_v34 = vld [vmem:[#allocation24_spill] sm:$0xff] }
 0x296   :  { %932 = vmatmul.mubr.bf16.vlgmr.msra.gmra.mrb[12].mxu1 %v842_v32 }
 0x297   :  { %876 = vmatprep.mubr.bf16.mxu0 %v843_v43  ;;  %1888 = vmatpush3.bf16.msra.mxu1 %v2718_v54 }
 0x298   :  { %877 = vmatmul.mubr.bf16.vlgmr.msra.gmra.mrb[12].mxu0 %v842_v32  ;;  %1889 = vmatprep.subr.bf16.mxu1 %v2720_v55  ;;  %v898_v32 = vld [vmem:[#allocation3 + $0x8] sm:$0xf] }
 0x299   :  { %941 = vmatpush1.bf16.msra.mxu0 %v2635_v30  ;;  %972 = vmatprep.mubr.bf16.mxu0 %v3251_v0 }
 0x29a   :  { %942 = vmatprep.subr.bf16.mxu0 %v2644_v33 }
 0x29b   :  { %1890 = vmatpush3.bf16.msra.mxu1 %v2725_v56 }
 0x29c   :  { %1891 = vmatprep.subr.bf16.mxu1 %v2728_v57 }
 0x29d   :  { %943 = vmatpush1.bf16.msra.mxu0 %v2648_v35 }
 0x29e   :  { %944 = vmatprep.subr.bf16.mxu0 %v2652_v37 }
 0x29f   :  { %1892 = vmatpush3.bf16.msra.mxu1 %v2731_v58 }
 0x2a0   :  { %1893 = vmatprep.subr.bf16.mxu1 %v2734_v59 }
 0x2a1   :  { %945 = vmatpush1.bf16.msra.mxu0 %v2661_v40 }
 0x2a2   :  { %946 = vmatprep.subr.bf16.mxu0 %v2663_v41 }
 0x2a3   :  { %1894 = vmatpush3.bf16.msra.mxu1 %v2737_v60 }
 0x2a4   :  { %1895 = vmatprep.subr.bf16.mxu1 %v2740_v61 }
 0x2a5   :  { %947 = vmatpush1.bf16.msra.mxu0 %v2669_v42 }
 0x2a6   :  { %948 = vmatprep.subr.bf16.mxu0 %v2674_v44 }
 0x2a7   :  { %1896 = vmatpush3.bf16.msra.mxu1 %v2743_v62 }
 0x2a8   :  { %1897 = vmatprep.subr.bf16.mxu1 %v2746_v63 }
 0x2a9   :  { %949 = vmatpush1.bf16.msra.mxu0 %v2677_v45 }
 0x2aa   :  { %950 = vmatprep.subr.bf16.mxu0 %v2680_v46 }
 0x2ab   :  { %1898 = vmatpush3.bf16.msra.mxu1 %v2749_v1 }
 0x2ac   :  { %1899 = vmatprep.subr.bf16.mxu1 %v2753_v2 }
 0x2ad   :  { %951 = vmatpush1.bf16.msra.mxu0 %v2683_v47 }
 0x2ae   :  { %952 = vmatprep.subr.bf16.mxu0 %v2686_v48 }
 0x2af   :  { %1900 = vmatpush3.bf16.msra.mxu1 %v2755_v3 }
 0x2b0   :  { %1901 = vmatprep.subr.bf16.mxu1 %v2759_v4 }
 0x2b1   :  { %953 = vmatpush1.bf16.msra.mxu0 %v2689_v49 }
 0x2b2   :  { %954 = vmatprep.subr.bf16.mxu0 %v2692_v50 }
 0x2b3   :  { %1902 = vmatpush3.bf16.msra.mxu1 %v2761_v5 }
 0x2b4   :  { %1081 = vmatprep.subr.bf16.mxu1 %v2633_v28 }
 0x2b5   :  { %955 = vmatpush1.bf16.msra.mxu0 %v2695_v51 }
 0x2b6   :  { %1040 = vmatprep.subr.bf16.mxu0 %v2602_v9 }
 0x2b8   :  { %973 = vmatmul.mubr.bf16.vlgmr.msra.gmra.mrb[16].mxu0 %v898_v32 }
 0x2b9   :  { %1041 = vmatpush1.bf16.msra.mxu0 %v2604_v10  ;;  %1072 = vmatprep.mubr.bf16.mxu0 %v3251_v0 }
 0x2ba   :  { %1042 = vmatprep.subr.bf16.mxu0 %v2608_v13 }
 0x2bd   :  { %1043 = vmatpush1.bf16.msra.mxu0 %v2610_v14 }
 0x2be   :  { %1044 = vmatprep.subr.bf16.mxu0 %v2613_v16 }
 0x2c1   :  { %1045 = vmatpush1.bf16.msra.mxu0 %v2616_v17 }
 0x2c2   :  { %1046 = vmatprep.subr.bf16.mxu0 %v2619_v19 }
 0x2c5   :  { %1047 = vmatpush1.bf16.msra.mxu0 %v2622_v22 }
 0x2c6   :  { %1048 = vmatprep.subr.bf16.mxu0 %v2625_v23 }
 0x2c9   :  { %1049 = vmatpush1.bf16.msra.mxu0 %v2628_v25 }
 0x2ca   :  { %1050 = vmatprep.subr.bf16.mxu0 %v2631_v27 }
 0x2cd   :  { %1051 = vmatpush1.bf16.msra.mxu0 %v3259_v34 }
 0x2ce   :  { %1052 = vmatprep.subr.bf16.mxu0 %v3260_v36 }
 0x2d1   :  { %1053 = vmatpush1.bf16.msra.mxu0 %v3261_v38 }
 0x2d2   :  { %1054 = vmatprep.subr.bf16.mxu0 %v3262_v6 }
 0x2d5   :  { %1055 = vmatpush1.bf16.msra.mxu0 %v3263_v7 }
 0x2d6   :  { %1909 = vmatprep.subr.bf16.mxu0 %v3264_v12 }
 0x369   :  { %v933_v15 = vpop.f32.mrb[12].mxu1 }
 0x36a   :  { %v935_v24 = vpop.f32.mrb[13].mxu1 }
 0x36b   :  { %v1881_v39 = vpop.f32.mrb[12].mxu0  ;;  %v937_v52 = vpop.f32.mrb[14].mxu1 }
 0x36c   :  { %v1882_v8 = vpop.f32.mrb[13].mxu0  ;;  %v938_v18 = vpop.f32.mrb[15].mxu1 }
 0x36d   :  { %v1883_v21 = vadd.f32 %v1882_v8, %v1881_v39  ;;  %v1884_v31 = vpop.f32.mrb[14].mxu0 }
 0x36e   :  { %v1885_v26 = vpop.f32.mrb[15].mxu0 }
 0x36f   :  { %v2887_v43 = vadd.f32 %v1883_v21, %v2828_v29 }
 0x371   :  { %3265 = vst [vmem:[#allocation31_spill] sm:$0xff] %v2887_v43  ;;  %884 = vmax.xlane.f32.xlu0 %v2887_v43 }
 0x38b   :  { %v974_v32 = vpop.f32.mrb[16].mxu0 }
 0x38c   :  { %v975_v20 = vadd.f32 %v974_v32, %v933_v15  ;;  %v976_v6 = vpop.f32.mrb[17].mxu0 }
 0x38d   :  { %v977_v7 = vadd.f32 %v976_v6, %v935_v24  ;;  %v978_v38 = vpop.f32.mrb[18].mxu0  ;;  %v3269_v6 = vld [vmem:[#allocation27_spill] sm:$0xff] }
 0x38e   :  { %v981_v12 = vadd.f32 %v975_v20, %v2769_v53  ;;  %v979_v36 = vpop.f32.mrb[19].mxu0  ;;  %v1039_v20 = vld [vmem:[#allocation3 + $0xc] sm:$0xf]  ;;  %v3268_v38 = vld [vmem:[#allocation26_spill] sm:$0xff] }
 0x38f   :  { %v982_v52 = vadd.f32 %v977_v7, %v2771_v11  ;;  %v3267_v36 = vld [vmem:[#allocation25_spill] sm:$0xff]  ;;  %v3270_v7 = vld [vmem:[#allocation28_spill] sm:$0xff] }
 0x390   :  { %v983_v34 = vpack.c.bf16 %v981_v12, %v981_v12  ;;  %v3271_v12 = vld [vmem:[#allocation29_spill] sm:$0xff] }
 0x391   :  { %v984_v18 = vpack.c.bf16 %v982_v52, %v982_v52 }
 0x392   :  { %1073 = vmatmul.mubr.bf16.vlgmr.msra.gmra.mrb[20].mxu0 %v983_v34 }
 0x393   :  { %1017 = vmatprep.mubr.bf16.mxu1 %v984_v18  ;;  %1910 = vmatpush3.bf16.msra.mxu0 %v2718_v54 }
 0x394   :  { %1018 = vmatmul.mubr.bf16.vlgmr.msra.gmra.mrb[16].mxu1 %v983_v34  ;;  %1911 = vmatprep.subr.bf16.mxu0 %v2720_v55  ;;  %v3266_v34 = vld [vmem:[#allocation24_spill] sm:$0xff] }
 0x395   :  { %1082 = vmatpush1.bf16.msra.mxu1 %v2635_v30  ;;  %1113 = vmatprep.mubr.bf16.mxu1 %v3251_v0 }
 0x396   :  { %1083 = vmatprep.subr.bf16.mxu1 %v2644_v33 }
 0x397   :  { %1912 = vmatpush3.bf16.msra.mxu0 %v2725_v56 }
 0x398   :  { %1913 = vmatprep.subr.bf16.mxu0 %v2728_v57 }
 0x399   :  { %1084 = vmatpush1.bf16.msra.mxu1 %v2648_v35 }
 0x39a   :  { %1085 = vmatprep.subr.bf16.mxu1 %v2652_v37 }
 0x39b   :  { %1914 = vmatpush3.bf16.msra.mxu0 %v2731_v58 }
 0x39c   :  { %1915 = vmatprep.subr.bf16.mxu0 %v2734_v59 }
 0x39d   :  { %1086 = vmatpush1.bf16.msra.mxu1 %v2661_v40 }
 0x39e   :  { %1087 = vmatprep.subr.bf16.mxu1 %v2663_v41 }
 0x39f   :  { %1916 = vmatpush3.bf16.msra.mxu0 %v2737_v60 }
 0x3a0   :  { %1917 = vmatprep.subr.bf16.mxu0 %v2740_v61 }
 0x3a1   :  { %1088 = vmatpush1.bf16.msra.mxu1 %v2669_v42 }
 0x3a2   :  { %1089 = vmatprep.subr.bf16.mxu1 %v2674_v44 }
 0x3a3   :  { %1918 = vmatpush3.bf16.msra.mxu0 %v2743_v62 }
 0x3a4   :  { %1919 = vmatprep.subr.bf16.mxu0 %v2746_v63 }
 0x3a5   :  { %1090 = vmatpush1.bf16.msra.mxu1 %v2677_v45 }
 0x3a6   :  { %1091 = vmatprep.subr.bf16.mxu1 %v2680_v46 }
 0x3a7   :  { %1920 = vmatpush3.bf16.msra.mxu0 %v2749_v1 }
 0x3a8   :  { %1921 = vmatprep.subr.bf16.mxu0 %v2753_v2 }
 0x3a9   :  { %1092 = vmatpush1.bf16.msra.mxu1 %v2683_v47 }
 0x3aa   :  { %1093 = vmatprep.subr.bf16.mxu1 %v2686_v48 }
 0x3ab   :  { %1922 = vmatpush3.bf16.msra.mxu0 %v2755_v3 }
 0x3ac   :  { %1923 = vmatprep.subr.bf16.mxu0 %v2759_v4 }
 0x3ad   :  { %1094 = vmatpush1.bf16.msra.mxu1 %v2689_v49 }
 0x3ae   :  { %1095 = vmatprep.subr.bf16.mxu1 %v2692_v50 }
 0x3af   :  { %1924 = vmatpush3.bf16.msra.mxu0 %v2761_v5 }
 0x3b0   :  { %1222 = vmatprep.subr.bf16.mxu0 %v2633_v28 }
 0x3b1   :  { %1096 = vmatpush1.bf16.msra.mxu1 %v2695_v51 }
 0x3b2   :  { %1181 = vmatprep.subr.bf16.mxu1 %v2602_v9 }
 0x3b4   :  { %1114 = vmatmul.mubr.bf16.vlgmr.msra.gmra.mrb[20].mxu1 %v1039_v20 }
 0x3b5   :  { %1182 = vmatpush1.bf16.msra.mxu1 %v2604_v10  ;;  %1213 = vmatprep.mubr.bf16.mxu1 %v3251_v0 }
 0x3b6   :  { %1183 = vmatprep.subr.bf16.mxu1 %v2608_v13 }
 0x3b9   :  { %1184 = vmatpush1.bf16.msra.mxu1 %v2610_v14 }
 0x3ba   :  { %1185 = vmatprep.subr.bf16.mxu1 %v2613_v16 }
 0x3bd   :  { %1186 = vmatpush1.bf16.msra.mxu1 %v2616_v17 }
 0x3be   :  { %1187 = vmatprep.subr.bf16.mxu1 %v2619_v19 }
 0x3c1   :  { %1188 = vmatpush1.bf16.msra.mxu1 %v2622_v22 }
 0x3c2   :  { %1189 = vmatprep.subr.bf16.mxu1 %v2625_v23 }
 0x3c5   :  { %1190 = vmatpush1.bf16.msra.mxu1 %v2628_v25 }
 0x3c6   :  { %1191 = vmatprep.subr.bf16.mxu1 %v2631_v27 }
 0x3c9   :  { %1192 = vmatpush1.bf16.msra.mxu1 %v3266_v34 }
 0x3ca   :  { %1193 = vmatprep.subr.bf16.mxu1 %v3267_v36 }
 0x3cd   :  { %1194 = vmatpush1.bf16.msra.mxu1 %v3268_v38 }
 0x3ce   :  { %1195 = vmatprep.subr.bf16.mxu1 %v3269_v6 }
 0x3d1   :  { %1196 = vmatpush1.bf16.msra.mxu1 %v3270_v7 }
 0x3d2   :  { %1931 = vmatprep.subr.bf16.mxu1 %v3271_v12 }
 0x465   :  { %v1074_v15 = vpop.f32.mrb[20].mxu0 }
 0x466   :  { %v1076_v24 = vpop.f32.mrb[21].mxu0 }
 0x467   :  { %v1903_v39 = vpop.f32.mrb[16].mxu1  ;;  %v1078_v8 = vpop.f32.mrb[22].mxu0 }
 0x468   :  { %v1904_v21 = vpop.f32.mrb[17].mxu1  ;;  %v1079_v31 = vpop.f32.mrb[23].mxu0 }
 0x469   :  { %v1905_v26 = vadd.f32 %v1904_v21, %v1903_v39  ;;  %v1906_v32 = vpop.f32.mrb[18].mxu1 }
 0x46a   :  { %v1907_v52 = vpop.f32.mrb[19].mxu1 }
 0x46b   :  { %v2943_v18 = vadd.f32 %v1905_v26, %v2828_v29 }
 0x46d   :  { %1025 = vmax.xlane.f32.xlu1 %v2943_v18 }
 0x487   :  { %v1115_v20 = vpop.f32.mrb[20].mxu1 }
 0x488   :  { %v1116_v43 = vadd.f32 %v1115_v20, %v1074_v15  ;;  %v1117_v6 = vpop.f32.mrb[21].mxu1 }
 0x489   :  { %v1118_v7 = vadd.f32 %v1117_v6, %v1076_v24  ;;  %v1119_v38 = vpop.f32.mrb[22].mxu1 }
 0x48a   :  { %v1122_v12 = vadd.f32 %v1116_v43, %v2769_v53  ;;  %v1120_v36 = vpop.f32.mrb[23].mxu1  ;;  %v1180_v43 = vld [vmem:[#allocation3 + $0x10] sm:$0xf] }
 0x48b   :  { %v1123_v8 = vadd.f32 %v1118_v7, %v2771_v11 }
 0x48c   :  { %v1124_v34 = vpack.c.bf16 %v1122_v12, %v1122_v12 }
 0x48d   :  { %v1125_v31 = vpack.c.bf16 %v1123_v8, %v1123_v8 }
 0x48e   :  { %1214 = vmatmul.mubr.bf16.vlgmr.msra.gmra.mrb[24].mxu1 %v1124_v34 }
 0x48f   :  { %1158 = vmatprep.mubr.bf16.mxu0 %v1125_v31  ;;  %1932 = vmatpush3.bf16.msra.mxu1 %v2718_v54  ;;  %v3055_v31 = vld [vmem:[#allocation12 + $0x34] ss:$8 sps:$4 sm:$0xff]  }
 0x490   :  { %1159 = vmatmul.mubr.bf16.vlgmr.msra.gmra.mrb[24].mxu0 %v1124_v34  ;;  %1933 = vmatprep.subr.bf16.mxu1 %v2720_v55 }
 0x491   :  { %1223 = vmatpush1.bf16.msra.mxu0 %v2635_v30  ;;  %1254 = vmatprep.mubr.bf16.mxu0 %v3251_v0 }
 0x492   :  { %1224 = vmatprep.subr.bf16.mxu0 %v2644_v33 }
 0x493   :  { %1934 = vmatpush3.bf16.msra.mxu1 %v2725_v56 }
 0x494   :  { %1935 = vmatprep.subr.bf16.mxu1 %v2728_v57 }
 0x495   :  { %1225 = vmatpush1.bf16.msra.mxu0 %v2648_v35 }
 0x496   :  { %1226 = vmatprep.subr.bf16.mxu0 %v2652_v37 }
 0x497   :  { %1936 = vmatpush3.bf16.msra.mxu1 %v2731_v58 }
 0x498   :  { %1937 = vmatprep.subr.bf16.mxu1 %v2734_v59 }
 0x499   :  { %1227 = vmatpush1.bf16.msra.mxu0 %v2661_v40 }
 0x49a   :  { %1228 = vmatprep.subr.bf16.mxu0 %v2663_v41 }
 0x49b   :  { %1938 = vmatpush3.bf16.msra.mxu1 %v2737_v60 }
 0x49c   :  { %1939 = vmatprep.subr.bf16.mxu1 %v2740_v61 }
 0x49d   :  { %1229 = vmatpush1.bf16.msra.mxu0 %v2669_v42 }
 0x49e   :  { %1230 = vmatprep.subr.bf16.mxu0 %v2674_v44 }
 0x49f   :  { %1940 = vmatpush3.bf16.msra.mxu1 %v2743_v62 }
 0x4a0   :  { %1941 = vmatprep.subr.bf16.mxu1 %v2746_v63 }
 0x4a1   :  { %1231 = vmatpush1.bf16.msra.mxu0 %v2677_v45 }
 0x4a2   :  { %1232 = vmatprep.subr.bf16.mxu0 %v2680_v46 }
 0x4a3   :  { %1942 = vmatpush3.bf16.msra.mxu1 %v2749_v1 }
 0x4a4   :  { %1943 = vmatprep.subr.bf16.mxu1 %v2753_v2 }
 0x4a5   :  { %1233 = vmatpush1.bf16.msra.mxu0 %v2683_v47 }
 0x4a6   :  { %1234 = vmatprep.subr.bf16.mxu0 %v2686_v48 }
 0x4a7   :  { %1944 = vmatpush3.bf16.msra.mxu1 %v2755_v3 }
 0x4a8   :  { %1945 = vmatprep.subr.bf16.mxu1 %v2759_v4 }
 0x4a9   :  { %1235 = vmatpush1.bf16.msra.mxu0 %v2689_v49 }
 0x4aa   :  { %1236 = vmatprep.subr.bf16.mxu0 %v2692_v50 }
 0x4ab   :  { %1946 = vmatpush3.bf16.msra.mxu1 %v2761_v5 }
 0x4ac   :  { %1363 = vmatprep.subr.bf16.mxu1 %v2633_v28 }
 0x4ad   :  { %1237 = vmatpush1.bf16.msra.mxu0 %v2695_v51 }
 0x4ae   :  { %1322 = vmatprep.subr.bf16.mxu0 %v2602_v9  ;;  %v3272_v9 = vld [vmem:[#allocation24_spill] sm:$0xff] }
 0x4b0   :  { %1255 = vmatmul.mubr.bf16.vlgmr.msra.gmra.mrb[28].mxu0 %v1180_v43  ;;  %v3058_v43 = vld [vmem:[#allocation12 + $0x30] ss:$8 sps:$4 sm:$0xff]  }
 0x4b1   :  { %1323 = vmatpush1.bf16.msra.mxu0 %v2604_v10  ;;  %1354 = vmatprep.mubr.bf16.mxu0 %v3251_v0  ;;  %v3273_v10 = vld [vmem:[#allocation25_spill] sm:$0xff] }
 0x4b2   :  { %1324 = vmatprep.subr.bf16.mxu0 %v2608_v13  ;;  %v3274_v13 = vld [vmem:[#allocation26_spill] sm:$0xff] }
 0x4b5   :  { %1325 = vmatpush1.bf16.msra.mxu0 %v2610_v14  ;;  %v3275_v14 = vld [vmem:[#allocation27_spill] sm:$0xff] }
 0x4b6   :  { %1326 = vmatprep.subr.bf16.mxu0 %v2613_v16  ;;  %v3276_v16 = vld [vmem:[#allocation28_spill] sm:$0xff] }
 0x4b9   :  { %1327 = vmatpush1.bf16.msra.mxu0 %v2616_v17  ;;  %v3277_v17 = vld [vmem:[#allocation29_spill] sm:$0xff] }
 0x4ba   :  { %1328 = vmatprep.subr.bf16.mxu0 %v2619_v19 }
 0x4bd   :  { %1329 = vmatpush1.bf16.msra.mxu0 %v2622_v22 }
 0x4be   :  { %1330 = vmatprep.subr.bf16.mxu0 %v2625_v23 }
 0x4c1   :  { %1331 = vmatpush1.bf16.msra.mxu0 %v2628_v25 }
 0x4c2   :  { %1332 = vmatprep.subr.bf16.mxu0 %v2631_v27 }
 0x4c5   :  { %1333 = vmatpush1.bf16.msra.mxu0 %v3272_v9  ;;  %v3061_v9 = vld [vmem:[#allocation12 + $0x44] ss:$8 sps:$4 sm:$0xff]  }
 0x4c6   :  { %1334 = vmatprep.subr.bf16.mxu0 %v3273_v10  ;;  %v3064_v10 = vld [vmem:[#allocation12 + $0x40] ss:$8 sps:$4 sm:$0xff]  }
 0x4c9   :  { %1335 = vmatpush1.bf16.msra.mxu0 %v3274_v13 }
 0x4ca   :  { %1336 = vmatprep.subr.bf16.mxu0 %v3275_v14 }
 0x4cd   :  { %1337 = vmatpush1.bf16.msra.mxu0 %v3276_v16 }
 0x4ce   :  { %1953 = vmatprep.subr.bf16.mxu0 %v3277_v17 }
 0x561   :  { %v1215_v19 = vpop.f32.mrb[24].mxu1 }
 0x562   :  { %v1217_v22 = vpop.f32.mrb[25].mxu1 }
 0x563   :  { %v1925_v34 = vpop.f32.mrb[24].mxu0  ;;  %v1219_v23 = vpop.f32.mrb[26].mxu1 }
 0x564   :  { %v1926_v36 = vpop.f32.mrb[25].mxu0  ;;  %v1220_v25 = vpop.f32.mrb[27].mxu1 }
 0x565   :  { %v1927_v38 = vadd.f32 %v1926_v36, %v1925_v34  ;;  %v1928_v27 = vpop.f32.mrb[26].mxu0  ;;  %v3073_v34 = vld [vmem:[#allocation12 + $0x64] ss:$8 sps:$4 sm:$0xff]  }
 0x566   :  { %v1929_v6 = vpop.f32.mrb[27].mxu0 }
 0x567   :  { %v2999_v7 = vadd.f32 %v1927_v38, %v2828_v29 }
 0x569   :  { %1166 = vmax.xlane.f32.xlu1 %v2999_v7 }
 0x583   :  { %v1256_v12 = vpop.f32.mrb[28].mxu0 }
 0x584   :  { %v1257_v15 = vadd.f32 %v1256_v12, %v1215_v19  ;;  %v1258_v24 = vpop.f32.mrb[29].mxu0  ;;  %v3067_v19 = vld [vmem:[#allocation12 + $0x54] ss:$8 sps:$4 sm:$0xff]  }
 0x585   :  { %v1259_v39 = vadd.f32 %v1258_v24, %v1217_v22  ;;  %v1260_v21 = vpop.f32.mrb[30].mxu0  ;;  %v3070_v22 = vld [vmem:[#allocation12 + $0x50] ss:$8 sps:$4 sm:$0xff]  }
 0x586   :  { %v1263_v26 = vadd.f32 %v1257_v15, %v2769_v53  ;;  %v1261_v32 = vpop.f32.mrb[31].mxu0 }
 0x587   :  { %v1264_v52 = vadd.f32 %v1259_v39, %v2771_v11 }
 0x588   :  { %v1265_v20 = vpack.c.bf16 %v1263_v26, %v1263_v26 }
 0x589   :  { %v1266_v8 = vpack.c.bf16 %v1264_v52, %v1264_v52 }
 0x58a   :  { %1355 = vmatmul.mubr.bf16.vlgmr.msra.gmra.mrb[32].mxu0 %v1265_v20 }
 0x58b   :  { %1299 = vmatprep.mubr.bf16.mxu1 %v1266_v8  ;;  %1954 = vmatpush3.bf16.msra.mxu0 %v2718_v54 }
 0x58c   :  { %1300 = vmatmul.mubr.bf16.vlgmr.msra.gmra.mrb[28].mxu1 %v1265_v20  ;;  %1955 = vmatprep.subr.bf16.mxu0 %v2720_v55 }
 0x58d   :  { %1364 = vmatpush1.bf16.msra.mxu1 %v2635_v30  ;;  %1395 = vmatprep.mubr.bf16.mxu1 %v3251_v0  ;;  %v1321_v30 = vld [vmem:[#allocation3 + $0x14] sm:$0xf] }
 0x58e   :  { %1365 = vmatprep.subr.bf16.mxu1 %v2644_v33  ;;  %v3036_v33 = vld [vmem:[#allocation12 + $0x4] ss:$8 sps:$4 sm:$0xff]  }
 0x58f   :  { %1956 = vmatpush3.bf16.msra.mxu0 %v2725_v56 }
 0x590   :  { %1957 = vmatprep.subr.bf16.mxu0 %v2728_v57 }
 0x591   :  { %1366 = vmatpush1.bf16.msra.mxu1 %v2648_v35  ;;  %v3039_v35 = vld [vmem:[#allocation12] ss:$8 sps:$4 sm:$0xff]  }
 0x592   :  { %1367 = vmatprep.subr.bf16.mxu1 %v2652_v37  ;;  %v3043_v37 = vld [vmem:[#allocation12 + $0x14] ss:$8 sps:$4 sm:$0xff]  }
 0x593   :  { %1958 = vmatpush3.bf16.msra.mxu0 %v2731_v58 }
 0x594   :  { %1959 = vmatprep.subr.bf16.mxu0 %v2734_v59 }
 0x595   :  { %1368 = vmatpush1.bf16.msra.mxu1 %v2661_v40  ;;  %v3046_v40 = vld [vmem:[#allocation12 + $0x10] ss:$8 sps:$4 sm:$0xff]  }
 0x596   :  { %1369 = vmatprep.subr.bf16.mxu1 %v2663_v41  ;;  %v3052_v41 = vld [vmem:[#allocation12 + $0x20] ss:$8 sps:$4 sm:$0xff]  }
 0x597   :  { %1960 = vmatpush3.bf16.msra.mxu0 %v2737_v60 }
 0x598   :  { %1961 = vmatprep.subr.bf16.mxu0 %v2740_v61 }
 0x599   :  { %1370 = vmatpush1.bf16.msra.mxu1 %v2669_v42 }
 0x59a   :  { %1371 = vmatprep.subr.bf16.mxu1 %v2674_v44 }
 0x59b   :  { %1962 = vmatpush3.bf16.msra.mxu0 %v2743_v62 }
 0x59c   :  { %1963 = vmatprep.subr.bf16.mxu0 %v2746_v63 }
 0x59d   :  { %1372 = vmatpush1.bf16.msra.mxu1 %v2677_v45 }
 0x59e   :  { %1373 = vmatprep.subr.bf16.mxu1 %v2680_v46 }
 0x59f   :  { %1964 = vmatpush3.bf16.msra.mxu0 %v2749_v1 }
 0x5a0   :  { %1965 = vmatprep.subr.bf16.mxu0 %v2753_v2 }
 0x5a1   :  { %1374 = vmatpush1.bf16.msra.mxu1 %v2683_v47 }
 0x5a2   :  { %1375 = vmatprep.subr.bf16.mxu1 %v2686_v48 }
 0x5a3   :  { %1966 = vmatpush3.bf16.msra.mxu0 %v2755_v3 }
 0x5a4   :  { %1967 = vmatprep.subr.bf16.mxu0 %v2759_v4 }
 0x5a5   :  { %1376 = vmatpush1.bf16.msra.mxu1 %v2689_v49 }
 0x5a6   :  { %1377 = vmatprep.subr.bf16.mxu1 %v2692_v50 }
 0x5a7   :  { %1968 = vmatpush3.bf16.msra.mxu0 %v2761_v5 }
 0x5a8   :  { %1504 = vmatprep.subr.bf16.mxu0 %v2633_v28  ;;  %v3049_v28 = vld [vmem:[#allocation12 + $0x24] ss:$8 sps:$4 sm:$0xff]  }
 0x5a9   :  { %1378 = vmatpush1.bf16.msra.mxu1 %v2695_v51 }
 0x5aa   :  { %1463 = vmatprep.subr.bf16.mxu1 %v3036_v33 }
 0x5ac   :  { %1396 = vmatmul.mubr.bf16.vlgmr.msra.gmra.mrb[32].mxu1 %v1321_v30 }
 0x5ad   :  { %1464 = vmatpush1.bf16.msra.mxu1 %v3039_v35  ;;  %1495 = vmatprep.mubr.bf16.mxu1 %v3251_v0 }
 0x5ae   :  { %1465 = vmatprep.subr.bf16.mxu1 %v3043_v37 }
 0x5b1   :  { %1466 = vmatpush1.bf16.msra.mxu1 %v3046_v40 }
 0x5b2   :  { %1467 = vmatprep.subr.bf16.mxu1 %v3049_v28 }
 0x5b5   :  { %1468 = vmatpush1.bf16.msra.mxu1 %v3052_v41 }
 0x5b6   :  { %1469 = vmatprep.subr.bf16.mxu1 %v3055_v31 }
 0x5b9   :  { %1470 = vmatpush1.bf16.msra.mxu1 %v3058_v43 }
 0x5ba   :  { %1471 = vmatprep.subr.bf16.mxu1 %v3061_v9 }
 0x5bd   :  { %1472 = vmatpush1.bf16.msra.mxu1 %v3064_v10 }
 0x5be   :  { %1473 = vmatprep.subr.bf16.mxu1 %v3067_v19 }
 0x5c1   :  { %1474 = vmatpush1.bf16.msra.mxu1 %v3070_v22 }
 0x5c2   :  { %1475 = vmatprep.subr.bf16.mxu1 %v3073_v34 }
 0x5c5   :  { %1476 = vmatpush1.bf16.msra.mxu1 %v3274_v13 }
 0x5c6   :  { %1477 = vmatprep.subr.bf16.mxu1 %v3275_v14 }
 0x5c9   :  { %1478 = vmatpush1.bf16.msra.mxu1 %v3276_v16 }
 0x5ca   :  { %1975 = vmatprep.subr.bf16.mxu1 %v3277_v17 }
 0x65d   :  { %v1356_v23 = vpop.f32.mrb[32].mxu0 }
 0x65e   :  { %v1358_v36 = vpop.f32.mrb[33].mxu0 }
 0x65f   :  { %v1947_v25 = vpop.f32.mrb[28].mxu1  ;;  %v1360_v38 = vpop.f32.mrb[34].mxu0 }
 0x660   :  { %v1948_v27 = vpop.f32.mrb[29].mxu1  ;;  %v1361_v6 = vpop.f32.mrb[35].mxu0  ;;  %v3108_v38 = vld [vmem:[#allocation11 + $0x34] ss:$8 sps:$4 sm:$0xff]  }
 0x661   :  { %v1949_v12 = vadd.f32 %v1948_v27, %v1947_v25  ;;  %v1950_v15 = vpop.f32.mrb[30].mxu1  ;;  %v3088_v25 = vld [vmem:[#allocation11] ss:$8 sps:$4 sm:$0xff]   ;;  %v2189_v6 = vld [vmem:[#allocation11 + $0x54] ss:$8 sps:$4 sm:$0xff]  }
 0x662   :  { %v1951_v24 = vpop.f32.mrb[31].mxu1  ;;  %v2188_v27 = vld [vmem:[#allocation11 + $0x40] ss:$8 sps:$4 sm:$0xff]   ;;  %v2191_v15 = vld [vmem:[#allocation14 + $0x70] sm:$0xff]  }
 0x663   :  { %v3081_v39 = vadd.f32 %v1949_v12, %v2828_v29  ;;  %v2190_v12 = vld [vmem:[#allocation14 + $0x28] sm:$0xff]   ;;  %v2192_v24 = vld [vmem:[#allocation11 + $0x50] ss:$8 sps:$4 sm:$0xff]  }
 0x665   :  { %1307 = vmax.xlane.f32.xlu0 %v3081_v39 }
 0x67f   :  { %v1397_v13 = vpop.f32.mrb[32].mxu1 }
 0x680   :  { %v1398_v14 = vadd.f32 %v1397_v13, %v1356_v23  ;;  %v1399_v21 = vpop.f32.mrb[33].mxu1  ;;  %v3092_v23 = vld [vmem:[#allocation11 + $0x14] ss:$8 sps:$4 sm:$0xff]   ;;  %v2193_v13 = vld [vmem:[#allocation11 + $0x64] ss:$8 sps:$4 sm:$0xff]  }
 0x681   :  { %v1400_v16 = vadd.f32 %v1399_v21, %v1358_v36  ;;  %v1401_v26 = vpop.f32.mrb[34].mxu1  ;;  %v3097_v36 = vld [vmem:[#allocation11 + $0x10] ss:$8 sps:$4 sm:$0xff]  }
 0x682   :  { %v1404_v32 = vadd.f32 %v1398_v14, %v2769_v53  ;;  %v1402_v52 = vpop.f32.mrb[35].mxu1  ;;  %v2194_v14 = vld [vmem:[#allocation14 + $0x30] sm:$0xff]   ;;  %v2195_v21 = vld [vmem:[#allocation14 + $0x78] sm:$0xff]  }
 0x683   :  { %v1405_v20 = vadd.f32 %v1400_v16, %v2771_v11  ;;  %v2196_v16 = vld [vmem:[#allocation11 + $0x60] ss:$8 sps:$4 sm:$0xff]   ;;  %v2197_v26 = vld [vmem:[#allocation11 + $0x74] ss:$8 sps:$4 sm:$0xff]   ;;  %v2199_v52 = vld [vmem:[#allocation11 + $0x70] ss:$8 sps:$4 sm:$0xff]  }
 0x684   :  { %v1406_v8 = vpack.c.bf16 %v1404_v32, %v1404_v32  ;;  %v2198_v32 = vld [vmem:[#allocation14 + $0x38] sm:$0xff]  }
 0x685   :  { %v1407_v30 = vpack.c.bf16 %v1405_v20, %v1405_v20  ;;  %v1603_v20 = vld [vmem:[#allocation3 + $0x1c] sm:$0xf] }
 0x686   :  { %1496 = vmatmul.mubr.bf16.vlgmr.msra.gmra.mrb[36].mxu1 %v1406_v8 }
 0x687   :  { %1440 = vmatprep.mubr.bf16.mxu0 %v1407_v30  ;;  %1976 = vmatpush3.bf16.msra.mxu1 %v2718_v54  ;;  %v3100_v54 = vld [vmem:[#allocation11 + $0x24] ss:$8 sps:$4 sm:$0xff]   ;;  %v3278_v30 = vld [vmem:[#allocation30_spill] sm:$0xff] }
 0x688   :  { %1441 = vmatmul.mubr.bf16.vlgmr.msra.gmra.mrb[36].mxu0 %v1406_v8  ;;  %1977 = vmatprep.subr.bf16.mxu1 %v2720_v55  ;;  %v3105_v55 = vld [vmem:[#allocation11 + $0x20] ss:$8 sps:$4 sm:$0xff]   ;;  %v745_v8 = vpop.xlane.xlu0 %744 }
 0x689   :  { %1505 = vmatpush1.bf16.msra.mxu0 %v3088_v25  ;;  %1536 = vmatprep.mubr.bf16.mxu0 %v3251_v0 }
 0x68a   :  { %1506 = vmatprep.subr.bf16.mxu0 %v3092_v23 }
 0x68b   :  { %1978 = vmatpush3.bf16.msra.mxu1 %v2725_v56 }
 0x68c   :  { %1979 = vmatprep.subr.bf16.mxu1 %v2728_v57 }
 0x68d   :  { %1507 = vmatpush1.bf16.msra.mxu0 %v3097_v36 }
 0x68e   :  { %1508 = vmatprep.subr.bf16.mxu0 %v3100_v54 }
 0x68f   :  { %1980 = vmatpush3.bf16.msra.mxu1 %v2731_v58 }
 0x690   :  { %1981 = vmatprep.subr.bf16.mxu1 %v2734_v59 }
 0x691   :  { %1509 = vmatpush1.bf16.msra.mxu0 %v3105_v55 }
 0x692   :  { %1510 = vmatprep.subr.bf16.mxu0 %v3108_v38 }
 0x693   :  { %1982 = vmatpush3.bf16.msra.mxu1 %v2737_v60 }
 0x694   :  { %1983 = vmatprep.subr.bf16.mxu1 %v2740_v61 }
 0x695   :  { %1511 = vmatpush1.bf16.msra.mxu0 %v2669_v42  ;;  %v2172_v42 = vld [vmem:[#allocation11 + $0x4] ss:$8 sps:$4 sm:$0xff]  }
 0x696   :  { %1512 = vmatprep.subr.bf16.mxu0 %v2674_v44  ;;  %v1462_v44 = vld [vmem:[#allocation3 + $0x18] sm:$0xf] }
 0x697   :  { %1984 = vmatpush3.bf16.msra.mxu1 %v2743_v62 }
 0x698   :  { %1985 = vmatprep.subr.bf16.mxu1 %v2746_v63 }
 0x699   :  { %1513 = vmatpush1.bf16.msra.mxu0 %v2677_v45  ;;  %v2173_v45 = vld [vmem:[#allocation12 + $0x60] ss:$8 sps:$4 sm:$0xff]  }
 0x69a   :  { %1514 = vmatprep.subr.bf16.mxu0 %v2680_v46  ;;  %v2174_v46 = vld [vmem:[#allocation12 + $0x74] ss:$8 sps:$4 sm:$0xff]  }
 0x69b   :  { %1986 = vmatpush3.bf16.msra.mxu1 %v2749_v1 }
 0x69c   :  { %1987 = vmatprep.subr.bf16.mxu1 %v2753_v2 }
 0x69d   :  { %1515 = vmatpush1.bf16.msra.mxu0 %v2683_v47  ;;  %v2175_v47 = vld [vmem:[#allocation12 + $0x70] ss:$8 sps:$4 sm:$0xff]  }
 0x69e   :  { %1516 = vmatprep.subr.bf16.mxu0 %v2686_v48 }
 0x69f   :  { %1988 = vmatpush3.bf16.msra.mxu1 %v2755_v3 }
 0x6a0   :  { %1989 = vmatprep.subr.bf16.mxu1 %v2759_v4 }
 0x6a1   :  { %1517 = vmatpush1.bf16.msra.mxu0 %v2689_v49 }
 0x6a2   :  { %1518 = vmatprep.subr.bf16.mxu0 %v2692_v50 }
 0x6a3   :  { %1990 = vmatpush3.bf16.msra.mxu1 %v2761_v5 }
 0x6a4   :  { %1645 = vmatprep.subr.bf16.mxu1 %v2172_v42 }
 0x6a5   :  { %1519 = vmatpush1.bf16.msra.mxu0 %v2695_v51 }
 0x6a6   :  { %1604 = vmatprep.subr.bf16.mxu0 %v3036_v33 }
 0x6a8   :  { %1537 = vmatmul.mubr.bf16.vlgmr.msra.gmra.mrb[40].mxu0 %v1462_v44 }
 0x6a9   :  { %1605 = vmatpush1.bf16.msra.mxu0 %v3039_v35  ;;  %1636 = vmatprep.mubr.bf16.mxu0 %v3251_v0 }
 0x6aa   :  { %1606 = vmatprep.subr.bf16.mxu0 %v3043_v37  ;;  %v2176_v37 = vld [vmem:[#allocation14] sm:$0xff]  }
 0x6ad   :  { %1607 = vmatpush1.bf16.msra.mxu0 %v3046_v40  ;;  %v2177_v40 = vld [vmem:[#allocation14 + $0x48] sm:$0xff]  }
 0x6ae   :  { %1608 = vmatprep.subr.bf16.mxu0 %v3049_v28  ;;  %v2178_v28 = vld [vmem:[#allocation14 + $0x8] sm:$0xff]  }
 0x6b1   :  { %1609 = vmatpush1.bf16.msra.mxu0 %v3052_v41  ;;  %v2179_v41 = vld [vmem:[#allocation14 + $0x50] sm:$0xff]  }
 0x6b2   :  { %1610 = vmatprep.subr.bf16.mxu0 %v3055_v31  ;;  %v2180_v31 = vld [vmem:[#allocation14 + $0x10] sm:$0xff]  }
 0x6b5   :  { %1611 = vmatpush1.bf16.msra.mxu0 %v3058_v43  ;;  %v2181_v43 = vld [vmem:[#allocation14 + $0x58] sm:$0xff]  }
 0x6b6   :  { %1612 = vmatprep.subr.bf16.mxu0 %v3061_v9  ;;  %v2182_v9 = vld [vmem:[#allocation14 + $0x18] sm:$0xff]  }
 0x6b9   :  { %1613 = vmatpush1.bf16.msra.mxu0 %v3064_v10  ;;  %v2184_v10 = vld [vmem:[#allocation11 + $0x30] ss:$8 sps:$4 sm:$0xff]  }
 0x6ba   :  { %1614 = vmatprep.subr.bf16.mxu0 %v3067_v19  ;;  %v2185_v19 = vld [vmem:[#allocation11 + $0x44] ss:$8 sps:$4 sm:$0xff]  }
 0x6bd   :  { %1615 = vmatpush1.bf16.msra.mxu0 %v3070_v22  ;;  %v2186_v22 = vld [vmem:[#allocation14 + $0x20] sm:$0xff]  }
 0x6be   :  { %1616 = vmatprep.subr.bf16.mxu0 %v3073_v34  ;;  %v2187_v34 = vld [vmem:[#allocation14 + $0x68] sm:$0xff]  }
 0x6c1   :  { %1617 = vmatpush1.bf16.msra.mxu0 %v2173_v45 }
 0x6c2   :  { %1618 = vmatprep.subr.bf16.mxu0 %v2174_v46 }
 0x6c5   :  { %1619 = vmatpush1.bf16.msra.mxu0 %v2175_v47 }
 0x6c6   :  { %1997 = vmatprep.subr.bf16.mxu0 %v3277_v17 }
 0x759   :  { %v1497_v48 = vpop.f32.mrb[36].mxu1 }
 0x75a   :  { %v1499_v49 = vpop.f32.mrb[37].mxu1 }
 0x75b   :  { %v1969_v50 = vpop.f32.mrb[36].mxu0  ;;  %v1501_v51 = vpop.f32.mrb[38].mxu1 }
 0x75c   :  { %v1970_v56 = vpop.f32.mrb[37].mxu0  ;;  %v1502_v57 = vpop.f32.mrb[39].mxu1 }
 0x75d   :  { %v1971_v58 = vadd.f32 %v1970_v56, %v1969_v50  ;;  %v1972_v59 = vpop.f32.mrb[38].mxu0 }
 0x75e   :  { %v1973_v60 = vpop.f32.mrb[39].mxu0 }
 0x75f   :  { %v3145_v61 = vadd.f32 %v1971_v58, %v2828_v29 }
 0x761   :  { %1448 = vmax.xlane.f32.xlu1 %v3145_v61 }
 0x77b   :  { %v1538_v62 = vpop.f32.mrb[40].mxu0 }
 0x77c   :  { %v1539_v63 = vadd.f32 %v1538_v62, %v1497_v48  ;;  %v1540_v1 = vpop.f32.mrb[41].mxu0 }
 0x77d   :  { %v1541_v2 = vadd.f32 %v1540_v1, %v1499_v49  ;;  %v1542_v3 = vpop.f32.mrb[42].mxu0 }
 0x77e   :  { %v1545_v4 = vadd.f32 %v1539_v63, %v2769_v53  ;;  %v1543_v5 = vpop.f32.mrb[43].mxu0 }
 0x77f   :  { %v1546_v17 = vadd.f32 %v1541_v2, %v2771_v11 }
 0x780   :  { %v1547_v33 = vpack.c.bf16 %v1545_v4, %v1545_v4 }
 0x781   :  { %v1548_v35 = vpack.c.bf16 %v1546_v17, %v1546_v17 }
 0x782   :  { %1637 = vmatmul.mubr.bf16.vlgmr.msra.gmra.mrb[44].mxu0 %v1547_v33 }
 0x783   :  { %1581 = vmatprep.mubr.bf16.mxu1 %v1548_v35  ;;  %1998 = vmatpush3.bf16.msra.mxu0 %v2176_v37 }
 0x784   :  { %1582 = vmatmul.mubr.bf16.vlgmr.msra.gmra.mrb[40].mxu1 %v1547_v33  ;;  %1999 = vmatprep.subr.bf16.mxu0 %v2177_v40 }
 0x785   :  { %1646 = vmatpush1.bf16.msra.mxu1 %v3088_v25  ;;  %1677 = vmatprep.mubr.bf16.mxu1 %v3251_v0  ;;  %v2183_v0 = vld [vmem:[#allocation14 + $0x60] sm:$0xff]   ;;  %v746_v25 = vsub.f32 %v3278_v30, %v745_v8 }
 0x786   :  { %1647 = vmatprep.subr.bf16.mxu1 %v3092_v23  ;;  %v3158_v23 = vpop.xlane.xlu0 %884 }
 0x787   :  { %2000 = vmatpush3.bf16.msra.mxu0 %v2178_v28 }
 0x788   :  { %2001 = vmatprep.subr.bf16.mxu0 %v2179_v41 }
 0x789   :  { %1648 = vmatpush1.bf16.msra.mxu1 %v3097_v36  ;;  %v1026_v36 = vpop.xlane.xlu1 %1025 }
 0x78a   :  { %1649 = vmatprep.subr.bf16.mxu1 %v3100_v54  ;;  %v747_v54 = vmul.f32 1.442695, %v746_v25 }
 0x78b   :  { %2002 = vmatpush3.bf16.msra.mxu0 %v2180_v31 }
 0x78c   :  { %2003 = vmatprep.subr.bf16.mxu0 %v2181_v43  ;;  %2121 = vpow2.f32 %v747_v54 }
 0x78d   :  { %1650 = vmatpush1.bf16.msra.mxu1 %v3105_v55  ;;  %v1027_v55 = vsub.f32 %v2943_v18, %v1026_v36 }
 0x78e   :  { %1651 = vmatprep.subr.bf16.mxu1 %v3108_v38  ;;  %v1308_v38 = vpop.xlane.xlu0 %1307 }
 0x78f   :  { %2004 = vmatpush3.bf16.msra.mxu0 %v2182_v9  ;;  %v1028_v44 = vmul.f32 1.442695, %v1027_v55  ;;  %v1309_v45 = vsub.f32 %v3081_v39, %v1308_v38  ;;  %v2200_v55 = vld [vmem:[%s3224_s8] ss:$0 sm:$0xff]  ;;  %s2423_s8 = smov [#allocation16]  }
 0x790   :  { %2005 = vmatprep.subr.bf16.mxu0 %v2183_v0  ;;  %s1762_s19 = sshll.u32 %s2423_s8, 4  ;;  %s1763_s19 = int_to_ptr.vmem [resolvable:$true] %s1762_s19 }
 0x791   :  { %1652 = vmatpush1.bf16.msra.mxu1 %v2184_v10  ;;  %2123 = vpow2.f32 %v1028_v44  ;;  %v1310_v57 = vmul.f32 1.442695, %v1309_v45  ;;  %s2355_s21 = scalar_lea.vmem %s1763_s19, 128  ;;  %p2360_p1 = scmp.lt.s32.totalorder %s1763_s19, %s1763_s19 }
 0x792   :  { %1653 = vmatprep.subr.bf16.mxu1 %v2185_v19  ;;  %p2356_p0 = scmp.ne.s32.totalorder %s1763_s19, %s2355_s21  ;;  %p2361_p2 = scmp.lt.s32.totalorder %s2355_s21, %s2355_s21 }
 0x793   :  { %2006 = vmatpush3.bf16.msra.mxu0 %v2186_v22  ;;  %2125 = vpow2.f32 %v1310_v57 }
 0x794   :  { %2007 = vmatprep.subr.bf16.mxu0 %v2187_v34  ;;  %p2362_p3 = por %p2361_p2, %p2360_p1 }
 0x795   :  { %1654 = vmatpush1.bf16.msra.mxu1 %v2188_v27 }
 0x796   :  { %1655 = vmatprep.subr.bf16.mxu1 %v2189_v6  ;;  %v2122_v60 = vpop.eup %2121  ;;  %p2363_p4 = pnand %p2362_p3, %p2356_p0 }
 0x797   :  { %2008 = vmatpush3.bf16.msra.mxu0 %v2190_v12 }
 0x798   :  { %2009 = vmatprep.subr.bf16.mxu0 %v2191_v15 }
 0x799   :  { %1656 = vmatpush1.bf16.msra.mxu1 %v2192_v24 }
 0x79a   :  { %1657 = vmatprep.subr.bf16.mxu1 %v2193_v13 }
 0x79b   :  { %2010 = vmatpush3.bf16.msra.mxu0 %v2194_v14  ;;  %v2124_v62 = vpop.eup %2123  ;;  %v3279_v14 = vld [vmem:[#allocation31_spill] sm:$0xff] }
 0x79c   :  { %2011 = vmatprep.subr.bf16.mxu0 %v2195_v21  ;;  %v886_v21 = vsub.f32 %v3279_v14, %v3158_v23 }
 0x79d   :  { %1658 = vmatpush1.bf16.msra.mxu1 %v2196_v16  ;;  %v2126_v63 = vpop.eup %2125  ;;  %v1167_v16 = vpop.xlane.xlu1 %1166 }
 0x79e   :  { %1659 = vmatprep.subr.bf16.mxu1 %v2197_v26  ;;  %v887_v26 = vmul.f32 1.442695, %v886_v21 }
 0x79f   :  { %2012 = vmatpush3.bf16.msra.mxu0 %v2198_v32  ;;  %v1168_v32 = vsub.f32 %v2999_v7, %v1167_v16 }
 0x7a1   :  { %1660 = vmatpush1.bf16.msra.mxu1 %v2199_v52 }
 0x7a4   :  { %1678 = vmatmul.mubr.bf16.vlgmr.msra.gmra.mrb[44].mxu1 %v1603_v20  ;;  %v1169_v20 = vmul.f32 1.442695, %v1168_v32 }
 0x7ee   :  { %v1449_v52 = vpop.xlane.xlu1 %1448 }
 0x855   :  { %v1638_v42 = vpop.f32.mrb[44].mxu0 }
 0x856   :  { %v1640_v46 = vpop.f32.mrb[45].mxu0 }
 0x857   :  { %v1991_v47 = vpop.f32.mrb[40].mxu1  ;;  %v1642_v48 = vpop.f32.mrb[46].mxu0 }
 0x858   :  { %v1992_v49 = vpop.f32.mrb[41].mxu1  ;;  %v1643_v50 = vpop.f32.mrb[47].mxu0 }
 0x859   :  { %v1993_v51 = vadd.f32 %v1992_v49, %v1991_v47  ;;  %v1994_v56 = vpop.f32.mrb[42].mxu1 }
 0x85a   :  { %v1995_v58 = vpop.f32.mrb[43].mxu1 }
 0x85b   :  { %v3163_v59 = vadd.f32 %v1993_v51, %v2828_v29 }
 0x85d   :  { %1589 = vmax.xlane.f32.xlu0 %v3163_v59 }
 0x861   :  { %749 = vadd.xlane.f32.xlu0 %v2122_v60 }
 0x865   :  { %1030 = vadd.xlane.f32.xlu0 %v2124_v62 }
 0x869   :  { %1312 = vadd.xlane.f32.xlu0 %v2126_v63 }
 0x877   :  { %v1679_v1 = vpop.f32.mrb[44].mxu1 }
 0x878   :  { %v1680_v2 = vadd.f32 %v1679_v1, %v1638_v42  ;;  %v1681_v3 = vpop.f32.mrb[45].mxu1 }
 0x879   :  { %v1682_v4 = vadd.f32 %v1681_v3, %v1640_v46  ;;  %v1683_v5 = vpop.f32.mrb[46].mxu1 }
 0x87a   :  { %v1686_v17 = vadd.f32 %v1680_v2, %v2769_v53  ;;  %v1684_v33 = vpop.f32.mrb[47].mxu1 }
 0x87b   :  { %v1687_v29 = vadd.f32 %v1682_v4, %v2771_v11 }
 0x87c   :  { %1743 = vst [vmem:[#allocation16] sm:$0xff] %v1686_v17  ;;  %v1688_v37 = vpack.c.bf16 %v1686_v17, %v1686_v17 }
 0x87d   :  { %v1689_v35 = vpack.c.bf16 %v1687_v29, %v1687_v29 }
 0x87f   :  { %1722 = vmatprep.mubr.bf16.mxu0 %v1689_v35 }
 0x880   :  { %1723 = vmatmul.mubr.bf16.vlgmr.msra.gmra.mrb[48].mxu0 %v1688_v37 }
 0x8ea   :  { %v1590_v40 = vpop.xlane.xlu0 %1589 }
 0x8eb   :  { %v1591_v28 = vsub.f32 %v3163_v59, %v1590_v40 }
 0x8ed   :  { %v1592_v41 = vmul.f32 1.442695, %v1591_v28 }
 0x8ee   :  { %v750_v31 = vpop.xlane.xlu0 %749 }
 0x8ef   :  { %2127 = vpow2.f32 %v1592_v41 }
 0x8f0   :  { %2129 = vlog2.f32 %v750_v31 }
 0x8f2   :  { %v1031_v43 = vpop.xlane.xlu0 %1030 }
 0x8f3   :  { %2131 = vlog2.f32 %v1031_v43 }
 0x8f6   :  { %v1313_v9 = vpop.xlane.xlu0 %1312 }
 0x8f7   :  { %2133 = vlog2.f32 %v1313_v9 }
 0x8f8   :  { %2135 = vpow2.f32 %v887_v26 }
 0x8f9   :  { %v2128_v53 = vpop.eup %2127  ;;  %2137 = vpow2.f32 %v1169_v20 }
 0x8fa   :  { %v2130_v0 = vpop.eup %2129  ;;  %1594 = vadd.xlane.f32.xlu0 %v2128_v53 }
 0x8fb   :  { %v752_v11 = vmul.f32 0.6931472, %v2130_v0 }
 0x8fd   :  { %v2132_v10 = vpop.eup %2131  ;;  %v753_v19 = vadd.f32 %v752_v11, %v745_v8  ;;  %v1450_v8 = vsub.f32 %v3145_v61, %v1449_v52 }
 0x8fe   :  { %v1033_v22 = vmul.f32 0.6931472, %v2132_v10 }
 0x8ff   :  { %v754_v34 = vsub.f32 %v3278_v30, %v753_v19  ;;  %v1451_v54 = vmul.f32 1.442695, %v1450_v8 }
 0x900   :  { %v1034_v27 = vadd.f32 %v1033_v22, %v1026_v36 }
 0x901   :  { %v2134_v6 = vpop.eup %2133  ;;  %755 = vst [vmem:[#allocation15] sm:$0xff] %v754_v34  ;;  %2139 = vpow2.f32 %v1451_v54 }
 0x902   :  { %v1035_v12 = vsub.f32 %v2943_v18, %v1034_v27  ;;  %v1315_v15 = vmul.f32 0.6931472, %v2134_v6  ;;  %v2136_v42 = vpop.eup %2135 }
 0x903   :  { %v2138_v44 = vpop.eup %2137 }
 0x904   :  { %1037 = vst [vmem:[#allocation15 + $0x10] sm:$0xff] %v1035_v12  ;;  %v1316_v24 = vadd.f32 %v1315_v15, %v1308_v38 }
 0x906   :  { %v1317_v13 = vsub.f32 %v3081_v39, %v1316_v24 }
 0x908   :  { %1319 = vst [vmem:[#allocation15 + $0x20] sm:$0xff] %v1317_v13 }
 0x90b   :  { %v2140_v45 = vpop.eup %2139 }
 0x953   :  { %v2013_v30 = vpop.f32.mrb[48].mxu0 }
 0x954   :  { %v2014_v18 = vpop.f32.mrb[49].mxu0 }
 0x955   :  { %v2015_v25 = vadd.f32 %v2014_v18, %v2013_v30  ;;  %v2016_v36 = vpop.f32.mrb[50].mxu0 }
 0x956   :  { %v2017_v39 = vpop.f32.mrb[51].mxu0 }
 0x957   :  { %v3179_v38 = vadd.f32 %v2200_v55, %v2015_v25 }
 0x959   :  { %1730 = vmax.xlane.f32.xlu1 %v3179_v38 }
 0x95d   :  { %889 = vadd.xlane.f32.xlu1 %v2136_v42 }
 0x961   :  { %1171 = vadd.xlane.f32.xlu1 %v2138_v44 }
 0x965   :  { %1453 = vadd.xlane.f32.xlu1 %v2140_v45 }
 0x987   :  { %v1595_v46 = vpop.xlane.xlu0 %1594 }
 0x988   :  { %2141 = vlog2.f32 %v1595_v46 }
 0x992   :  { %v2142_v47 = vpop.eup %2141 }
 0x993   :  { %v1597_v48 = vmul.f32 0.6931472, %v2142_v47 }
 0x995   :  { %v1598_v49 = vadd.f32 %v1597_v48, %v1590_v40 }
 0x997   :  { %v1599_v50 = vsub.f32 %v3163_v59, %v1598_v49 }
 0x999   :  { %1601 = vst [vmem:[#allocation15 + $0x30] sm:$0xff] %v1599_v50 }
 0x9e6   :  { %v1731_v51 = vpop.xlane.xlu1 %1730 }
 0x9e7   :  { %v1732_v56 = vsub.f32 %v3179_v38, %v1731_v51 }
 0x9e9   :  { %v1733_v57 = vmul.f32 1.442695, %v1732_v56 }
 0x9ea   :  { %v890_v58 = vpop.xlane.xlu1 %889 }
 0x9eb   :  { %2143 = vpow2.f32 %v1733_v57 }
 0x9ec   :  { %2145 = vlog2.f32 %v890_v58 }
 0x9ee   :  { %v1172_v60 = vpop.xlane.xlu1 %1171 }
 0x9ef   :  { %2147 = vlog2.f32 %v1172_v60 }
 0x9f2   :  { %v1454_v62 = vpop.xlane.xlu1 %1453 }
 0x9f3   :  { %2149 = vlog2.f32 %v1454_v62 }
 0x9f5   :  { %v2144_v63 = vpop.eup %2143 }
 0x9f6   :  { %v2146_v1 = vpop.eup %2145  ;;  %1735 = vadd.xlane.f32.xlu1 %v2144_v63 }
 0x9f7   :  { %v892_v2 = vmul.f32 0.6931472, %v2146_v1 }
 0x9f9   :  { %v2148_v3 = vpop.eup %2147  ;;  %v893_v4 = vadd.f32 %v892_v2, %v3158_v23 }
 0x9fa   :  { %v1174_v59 = vmul.f32 0.6931472, %v2148_v3 }
 0x9fb   :  { %v894_v5 = vsub.f32 %v3279_v14, %v893_v4 }
 0x9fc   :  { %v1175_v17 = vadd.f32 %v1174_v59, %v1167_v16 }
 0x9fd   :  { %v2150_v33 = vpop.eup %2149  ;;  %896 = vst [vmem:[#allocation15 + $0x8] sm:$0xff] %v894_v5 }
 0x9fe   :  { %v1176_v29 = vsub.f32 %v2999_v7, %v1175_v17  ;;  %v1456_v35 = vmul.f32 0.6931472, %v2150_v33 }
 0xa00   :  { %1178 = vst [vmem:[#allocation15 + $0x18] sm:$0xff] %v1176_v29  ;;  %v1457_v37 = vadd.f32 %v1456_v35, %v1449_v52 }
 0xa02   :  { %v1458_v40 = vsub.f32 %v3145_v61, %v1457_v37 }
 0xa04   :  { %1460 = vst [vmem:[#allocation15 + $0x28] sm:$0xff] %v1458_v40 }
 0xa05   :  { %2366 = shalt.err (!%p2363_p4)
}
 0xa06   :  { %s2367_s25 = scalar_lea.hbm %s3226_s10, 128 }
 0xa07   :  { %p2368_p5 = scmp.ne.s32.totalorder %s3226_s10, %s2367_s25  ;;  %p2371_p6 = scmp.lt.u32.totalorder %s2367_s25, %s3226_s10 }
 0xa09   :  { %p2373_p7 = pnand %p2371_p6, %p2368_p5 }
 0xa0b   :  { %2376 = shalt.err (!%p2373_p7)
}
 0xa0c   :  { %1765 = dma.vmem_to_hbm [thread:$0]  %s1763_s19, 128, %s3226_s10, [#allocation17]  }
 0xa0d   :  { %s2424_s30 = smov [#allocation15]  }
 0xa0e   :  { %s1749_s11 = sshll.u32 %s2424_s30, 4  ;;  %s1750_s11 = int_to_ptr.vmem [resolvable:$true] %s1749_s11 }
 0xa0f   :  { %s2377_s12 = scalar_lea.vmem %s1750_s11, 1024  ;;  %p2382_p9 = scmp.lt.s32.totalorder %s1750_s11, %s1750_s11 }
 0xa10   :  { %p2378_p8 = scmp.ne.s32.totalorder %s1750_s11, %s2377_s12  ;;  %p2383_p10 = scmp.lt.s32.totalorder %s2377_s12, %s2377_s12 }
 0xa12   :  { %p2384_p11 = por %p2383_p10, %p2382_p9 }
 0xa14   :  { %p2385_p12 = pnand %p2384_p11, %p2378_p8 }
 0xa83   :  { %v1736_v7 = vpop.xlane.xlu1 %1735 }
 0xa84   :  { %2151 = vlog2.f32 %v1736_v7 }
 0xa8e   :  { %v2152_v61 = vpop.eup %2151 }
 0xa8f   :  { %v1738_v23 = vmul.f32 0.6931472, %v2152_v61 }
 0xa91   :  { %v1739_v28 = vadd.f32 %v1738_v23, %v1731_v51 }
 0xa93   :  { %v1740_v41 = vsub.f32 %v3179_v38, %v1739_v28 }
 0xa95   :  { %1742 = vst [vmem:[#allocation15 + $0x38] sm:$0xff] %v1740_v41 }
 0xa96   :  { %2388 = shalt.err (!%p2385_p12)
}
 0xa97   :  { %s2389_s0 = scalar_lea.hbm %s3225_s9, 1024 }
 0xa98   :  { %p2390_p13 = scmp.ne.s32.totalorder %s3225_s9, %s2389_s0  ;;  %p2393_p0 = scmp.lt.u32.totalorder %s2389_s0, %s3225_s9 }
 0xa9a   :  { %p2395_p1 = pnand %p2393_p0, %p2390_p13 }
 0xa9c   :  { %2398 = shalt.err (!%p2395_p1)
}
 0xa9d   :  { %1755 = dma.vmem_to_hbm [thread:$0]  %s1750_s11, 1024, %s3225_s9, [#allocation5], %s2413_s1, %s2413_s1, %s2414_s14  }
 0xa9e   :  { %2407 = dma.done.wait [#allocation5], 1024  }
 0xa9f   :  { %2408 = vsyncadd [#allocation5], 4294966272 }
 0xaa0   :  { %2409 = dma.done.wait [#allocation17], 128  }
 0xaa1   :  { %2410 = vsyncadd [#allocation17], 4294967168 }
 0xaa2   :  { %1772 = vsyncpa [#allocation4], 1 }
 0xaa3   :  { %1773 = vsyncpa [#allocation7], 1 }
 0xaa4   :  { %1774 = vsyncpa [#allocation10], 1 }
 0xaa5   :  { %1775 = vsyncpa [#allocation13], 1 }
 0xaa6   :  { %1776 = vsyncpa [#allocation5], 1 }
 0xaa7   :  { %1777 = vsyncpa [#allocation17], 1 }

</bundles_post_ra>
